<compile_context>
chip_gen: v5e
topology: v5e:2x2
jax: 0.10.0
libtpu: 0.0.40
codegen_flags: <defaults>
</compile_context>

<pallas_src>
import functools

import jax
import jax.numpy as jnp
from jax import lax
from jax.experimental import pallas as pl
from jax.experimental.pallas import tpu as pltpu

EPS = 1e-5


def _round_up(a, b):
    return (a + b - 1) // b * b


def _res_block_kernel(Wp, x_ref, mask_ref, w1_ref, s1_ref, b1_ref,
                      w2_ref, s2_ref, b2_ref, out_ref, h1ext_ref):
    cout_p = w1_ref.shape[0]
    nb_lp = out_ref.shape[1]                       # Nb * Lp (lane-dense)
    halo = (x_ref.shape[1] - nb_lp) // 2           # 128-aligned halo width
    taps = [(kh - 1) * Wp + (kw - 1) for kh in range(3) for kw in range(3)]

    # ---- conv1: single MXU matmul over the 9-tap im2col (K = 9*Cin_p, bf16) ----
    p1 = jnp.concatenate(
        [x_ref[:, pl.ds(halo + d, nb_lp)] for d in taps], axis=0)   # (9*Cin_p, Nb*Lp)
    acc1 = jnp.dot(w1_ref[...], p1, preferred_element_type=jnp.float32)
    # fused BatchNorm + ReLU; mask zeroes the spatial pad ring and the Lp tail
    h1 = jnp.maximum(acc1 * s1_ref[...] + b1_ref[...], 0.0) * mask_ref[...]
    h1b = h1.astype(jnp.bfloat16)

    # ---- re-embed h1 into the bf16 halo band (aligned store); zero halos
    #      every step (safe under megacore grid sharding) ----
    zero_halo = jnp.zeros((cout_p, halo), jnp.bfloat16)
    h1ext_ref[:, pl.ds(0, halo)] = zero_halo
    h1ext_ref[:, pl.ds(halo + nb_lp, halo)] = zero_halo
    h1ext_ref[:, pl.ds(halo, nb_lp)] = h1b

    # ---- conv2: single MXU matmul (K = 9*Cout_p); centre tap reuses h1b ----
    p2 = jnp.concatenate(
        [h1b if d == 0 else h1ext_ref[:, pl.ds(halo + d, nb_lp)] for d in taps],
        axis=0)                                                      # (9*Cout_p, Nb*Lp)
    acc2 = jnp.dot(w2_ref[...], p2, preferred_element_type=jnp.float32)
    h2 = acc2 * s2_ref[...] + b2_ref[...]

    # ---- residual add + ReLU (residual read is lane-aligned) ----
    res = x_ref[:, pl.ds(halo, nb_lp)].astype(jnp.float32)
    out_ref[...] = jnp.maximum(h2 + res, 0.0).astype(out_ref.dtype)


def _pick_nb(n, cin_p, cout_p, lp, budget=8 << 20):
    """Largest divisor of n that fits the per-step VMEM budget and keeps grid >= 2."""
    per_img = (2 * 2 * cin_p * lp          # x block, bf16, double-buffered
               + 2 * 4 * cin_p * lp        # out block, f32, double-buffered
               + 2 * cout_p * lp           # h1 scratch, bf16
               + 2 * 9 * cin_p * lp        # p1 im2col, bf16
               + 2 * 9 * cout_p * lp       # p2 im2col, bf16
               + 4 * (cin_p + cout_p) * lp)  # f32 accumulators
    cap = max(1, budget // per_img)
    best = 1
    for d in range(1, n + 1):
        if n % d == 0 and d <= cap and (n // d >= 2 or (d == n == 1)):
            best = d
    return best


def residual_block_forward(x_nchw, kp, nb=None):
    N, Cin, H, W = x_nchw.shape
    cin_p, cout_p = kp["cin_p"], kp["cout_p"]
    Hp, Wp = H + 2, W + 2
    L = Hp * Wp
    Lp = _round_up(L, 128)                 # lane-dense per-image spatial width
    halo = _round_up(Wp + 1, 128)          # 128-aligned halo for the widest tap

    if nb is None:
        nb = _pick_nb(N, cin_p, cout_p, Lp)
    G = N // nb
    nb_lp = nb * Lp
    Lg = nb_lp + 2 * halo

    # pack: zero ring + channel pad -> flatten spatial -> pad tail to Lp ->
    # group Nb images along lanes -> add aligned halos -> bf16
    xp = jnp.pad(x_nchw, ((0, 0), (0, cin_p - Cin), (1, 1), (1, 1)))
    xf = jnp.pad(xp.reshape(N, cin_p, L), ((0, 0), (0, 0), (0, Lp - L)))
    xg = xf.reshape(G, nb, cin_p, Lp).transpose(0, 2, 1, 3).reshape(G, cin_p, nb_lp)
    x_packed = jnp.pad(xg, ((0, 0), (0, 0), (halo, halo))).astype(jnp.bfloat16)

    # mask = 1 on interior pixels, 0 on the pad ring and the [L, Lp) tail
    mask = jnp.zeros((Hp, Wp), jnp.float32).at[1:H + 1, 1:W + 1].set(1.0)
    mask = jnp.pad(mask.reshape(1, L), ((0, 0), (0, Lp - L)))
    mask = jnp.tile(mask, (1, nb))                                   # (1, Nb*Lp)

    flops = 4 * 9 * cin_p * cout_p * Lp * N            # two 3x3 convs
    bytes_accessed = (x_packed.size * 2 + G * cin_p * nb_lp * 4
                      + kp["w1"].size * 2 + kp["w2"].size * 2
                      + mask.size * 4 + 2 * (cin_p + cout_p) * 4)

    kernel = functools.partial(_res_block_kernel, Wp)
    out = pl.pallas_call(
        kernel,
        out_shape=jax.ShapeDtypeStruct((G, cin_p, nb_lp), x_nchw.dtype),
        grid_spec=pltpu.PrefetchScalarGridSpec(
            num_scalar_prefetch=0,
            grid=(G,),
            in_specs=[
                pl.BlockSpec((None, cin_p, Lg), lambda g: (g, 0, 0)),     # x (bf16)
                pl.BlockSpec((1, nb_lp), lambda g: (0, 0)),               # mask
                pl.BlockSpec((cout_p, 9 * cin_p), lambda g: (0, 0)),      # w1 (bf16)
                pl.BlockSpec((cout_p, 1), lambda g: (0, 0)),              # scale1
                pl.BlockSpec((cout_p, 1), lambda g: (0, 0)),              # bias1
                pl.BlockSpec((cin_p, 9 * cout_p), lambda g: (0, 0)),      # w2 (bf16)
                pl.BlockSpec((cin_p, 1), lambda g: (0, 0)),               # scale2
                pl.BlockSpec((cin_p, 1), lambda g: (0, 0)),               # bias2
            ],
            out_specs=pl.BlockSpec((None, cin_p, nb_lp), lambda g: (g, 0, 0)),
            scratch_shapes=[pltpu.VMEM((cout_p, Lg), jnp.bfloat16)],
        ),
        compiler_params=pltpu.CompilerParams(
            dimension_semantics=("parallel",),
            vmem_limit_bytes=32 * 1024 * 1024),
        cost_estimate=pl.CostEstimate(flops=flops, transcendentals=0,
                                      bytes_accessed=bytes_accessed),
    )(x_packed, mask, kp["w1"], kp["s1"], kp["b1"], kp["w2"], kp["s2"], kp["b2"])

    # unpack: split lane groups back into images, drop pad channels / ring / tail
    out = out.reshape(G, cin_p, nb, Lp).transpose(0, 2, 1, 3).reshape(N, cin_p, Lp)
    out = out[:, :Cin, :L].reshape(N, Cin, Hp, Wp)[:, :, 1:H + 1, 1:W + 1]
    return out


def init_raw_params(key, cin, cout):
    """Deterministic synthetic parameters matching nn.Conv2d / nn.BatchNorm2d shapes."""
    ks = jax.random.split(key, 12)
    p = {}
    p["w1"] = 0.1 * jax.random.normal(ks[0], (cout, cin, 3, 3), jnp.float32)   # OIHW
    p["b1c"] = 0.1 * jax.random.normal(ks[1], (cout,), jnp.float32)
    p["g1"] = 1.0 + 0.1 * jax.random.normal(ks[2], (cout,), jnp.float32)
    p["be1"] = 0.1 * jax.random.normal(ks[3], (cout,), jnp.float32)
    p["m1"] = 0.1 * jax.random.normal(ks[4], (cout,), jnp.float32)
    p["v1"] = 0.5 + jax.random.uniform(ks[5], (cout,), jnp.float32)
    p["w2"] = 0.1 * jax.random.normal(ks[6], (cin, cout, 3, 3), jnp.float32)   # OIHW
    p["b2c"] = 0.1 * jax.random.normal(ks[7], (cin,), jnp.float32)
    p["g2"] = 1.0 + 0.1 * jax.random.normal(ks[8], (cin,), jnp.float32)
    p["be2"] = 0.1 * jax.random.normal(ks[9], (cin,), jnp.float32)
    p["m2"] = 0.1 * jax.random.normal(ks[10], (cin,), jnp.float32)
    p["v2"] = 0.5 + jax.random.uniform(ks[11], (cin,), jnp.float32)
    return p


def fold_params(p):
    """OIHW conv weights -> (C_out_p, 9*C_in_p) tap-major bf16 (channels padded to 16);
    conv bias + eval-mode BN folded into per-channel scale/bias."""
    cout, cin = p["w1"].shape[0], p["w1"].shape[1]
    cin_p = _round_up(cin, 16)
    cout_p = _round_up(cout, 16)

    w1 = jnp.transpose(p["w1"], (2, 3, 1, 0))                                   # (3,3,ci,co)
    w1 = jnp.pad(w1, ((0, 0), (0, 0), (0, cin_p - cin), (0, cout_p - cout)))
    w1k = w1.reshape(9 * cin_p, cout_p).T.astype(jnp.bfloat16)                  # (co_p, 9*ci_p)

    w2 = jnp.transpose(p["w2"], (2, 3, 1, 0))                                   # (3,3,co,ci)
    w2 = jnp.pad(w2, ((0, 0), (0, 0), (0, cout_p - cout), (0, cin_p - cin)))
    w2k = w2.reshape(9 * cout_p, cin_p).T.astype(jnp.bfloat16)                  # (ci_p, 9*co_p)

    s1 = p["g1"] / jnp.sqrt(p["v1"] + EPS)
    b1 = (p["b1c"] - p["m1"]) * s1 + p["be1"]
    s2 = p["g2"] / jnp.sqrt(p["v2"] + EPS)
    b2 = (p["b2c"] - p["m2"]) * s2 + p["be2"]
    pad1 = lambda a: jnp.pad(a, (0, cout_p - cout))[:, None].astype(jnp.float32)
    pad2 = lambda a: jnp.pad(a, (0, cin_p - cin))[:, None].astype(jnp.float32)
    return dict(w1=w1k, s1=pad1(s1), b1=pad1(b1),
                w2=w2k, s2=pad2(s2), b2=pad2(b2),
                cin_p=cin_p, cout_p=cout_p)


def reference_forward(x, p, quantized=False):
    """Pure-JAX reference mirroring the PyTorch module (eval-mode BN).

    quantized=True applies the same bf16 quantization of the conv operands and
    the residual as the kernel (f32 accumulation), for apples-to-apples checks."""
    q = (lambda a: a.astype(jnp.bfloat16).astype(jnp.float32)) if quantized else (lambda a: a)

    def conv(a, w):
        return lax.conv_general_dilated(
            q(a), q(w), (1, 1), "SAME",
            dimension_numbers=("NCHW", "OIHW", "NCHW"),
            precision=lax.Precision.HIGHEST)

    def bn(a, g, be, m, v):
        return (a - m[None, :, None, None]) / jnp.sqrt(v[None, :, None, None] + EPS) \
            * g[None, :, None, None] + be[None, :, None, None]

    y = conv(x, p["w1"]) + p["b1c"][None, :, None, None]
    y = jnp.maximum(bn(y, p["g1"], p["be1"], p["m1"], p["v1"]), 0.0)
    y = conv(y, p["w2"]) + p["b2c"][None, :, None, None]
    y = bn(y, p["g2"], p["be2"], p["m2"], p["v2"])
    return jnp.maximum(y + q(x), 0.0)


def _check(x, raw, kparams):
    out = jax.block_until_ready(residual_block_forward(x, kparams))
    assert out.shape == x.shape
    ref_q = reference_forward(x, raw, quantized=True)     # bf16-matched reference
    ref_f = reference_forward(x, raw, quantized=False)    # full-f32 reference
    err_q = float(jnp.max(jnp.abs(out - ref_q)))
    err_f = float(jnp.max(jnp.abs(out - ref_f)))
    if not (err_q < 1e-2):
        raise AssertionError(f"mismatch vs bf16-matched reference: {err_q}")
    if not (err_f < 1e-1):
        raise AssertionError(f"mismatch vs f32 reference: {err_f}")


if __name__ == "__main__":
    Cin, Cout, H, W = 4, 8, 16, 16
    key = jax.random.PRNGKey(0)
    kx1, kx2, kp = jax.random.split(key, 3)

    raw = init_raw_params(kp, Cin, Cout)
    kparams = fold_params(raw)

    # N=2 -> Nb=1, grid=2 (both v7x cores busy)
    _check(jax.random.normal(kx1, (2, Cin, H, W), jnp.float32), raw, kparams)
    # N=4 -> Nb=2, grid=2 (exercises the packed multi-image-per-step path)
    _check(jax.random.normal(kx2, (4, Cin, H, W), jnp.float32), raw, kparams)

    print("KERNEL_OK")
</pallas_src>

<mosaic_0001>
module attributes {stable_mosaic.version = 11 : i64} {
  func.func @_res_block_kernel(%arg0: i32, %arg1: memref<1x16x640xbf16, #tpu.memory_space<vmem>>, %arg2: memref<1x384xf32, #tpu.memory_space<vmem>>, %arg3: memref<16x144xbf16, #tpu.memory_space<vmem>>, %arg4: memref<16x1xf32, #tpu.memory_space<vmem>>, %arg5: memref<16x1xf32, #tpu.memory_space<vmem>>, %arg6: memref<16x144xbf16, #tpu.memory_space<vmem>>, %arg7: memref<16x1xf32, #tpu.memory_space<vmem>>, %arg8: memref<16x1xf32, #tpu.memory_space<vmem>>, %arg9: memref<1x16x384xf32, #tpu.memory_space<vmem>>, %arg10: memref<16x640xbf16, #tpu.memory_space<vmem>>) attributes {dimension_semantics = [#tpu.dimension_semantics<parallel>], iteration_bounds = array<i64: 2>, scalar_prefetch = 0 : i64, scratch_operands = 1 : i64, tpu.core_type = #tpu.core_type<tc>, window_params = [{transform_indices = @transform_0, window_bounds = array<i64: 1, 16, 640>}, {pipeline_mode = #tpu.pipeline_mode<synchronous>, transform_indices = @transform_1, window_bounds = array<i64: 1, 384>}, {pipeline_mode = #tpu.pipeline_mode<synchronous>, transform_indices = @transform_2, window_bounds = array<i64: 16, 144>}, {pipeline_mode = #tpu.pipeline_mode<synchronous>, transform_indices = @transform_3, window_bounds = array<i64: 16, 1>}, {pipeline_mode = #tpu.pipeline_mode<synchronous>, transform_indices = @transform_4, window_bounds = array<i64: 16, 1>}, {pipeline_mode = #tpu.pipeline_mode<synchronous>, transform_indices = @transform_5, window_bounds = array<i64: 16, 144>}, {pipeline_mode = #tpu.pipeline_mode<synchronous>, transform_indices = @transform_6, window_bounds = array<i64: 16, 1>}, {pipeline_mode = #tpu.pipeline_mode<synchronous>, transform_indices = @transform_7, window_bounds = array<i64: 16, 1>}, {transform_indices = @transform_8, window_bounds = array<i64: 1, 16, 384>}]} {
    %c0 = arith.constant 0 : index
    %c0_0 = arith.constant 0 : index
    %c109 = arith.constant 109 : index
    %0 = vector.load %arg1[%c0, %c0_0, %c109] : memref<1x16x640xbf16, #tpu.memory_space<vmem>>, vector<1x16x384xbf16>
    %1 = vector.shape_cast %0 : vector<1x16x384xbf16> to vector<16x384xbf16>
    %c0_1 = arith.constant 0 : index
    %c0_2 = arith.constant 0 : index
    %c110 = arith.constant 110 : index
    %2 = vector.load %arg1[%c0_1, %c0_2, %c110] : memref<1x16x640xbf16, #tpu.memory_space<vmem>>, vector<1x16x384xbf16>
    %3 = vector.shape_cast %2 : vector<1x16x384xbf16> to vector<16x384xbf16>
    %c0_3 = arith.constant 0 : index
    %c0_4 = arith.constant 0 : index
    %c111 = arith.constant 111 : index
    %4 = vector.load %arg1[%c0_3, %c0_4, %c111] : memref<1x16x640xbf16, #tpu.memory_space<vmem>>, vector<1x16x384xbf16>
    %5 = vector.shape_cast %4 : vector<1x16x384xbf16> to vector<16x384xbf16>
    %c0_5 = arith.constant 0 : index
    %c0_6 = arith.constant 0 : index
    %c127 = arith.constant 127 : index
    %6 = vector.load %arg1[%c0_5, %c0_6, %c127] : memref<1x16x640xbf16, #tpu.memory_space<vmem>>, vector<1x16x384xbf16>
    %7 = vector.shape_cast %6 : vector<1x16x384xbf16> to vector<16x384xbf16>
    %c0_7 = arith.constant 0 : index
    %c0_8 = arith.constant 0 : index
    %c128 = arith.constant 128 : index
    %8 = vector.load %arg1[%c0_7, %c0_8, %c128] : memref<1x16x640xbf16, #tpu.memory_space<vmem>>, vector<1x16x384xbf16>
    %9 = vector.shape_cast %8 : vector<1x16x384xbf16> to vector<16x384xbf16>
    %c0_9 = arith.constant 0 : index
    %c0_10 = arith.constant 0 : index
    %c129 = arith.constant 129 : index
    %10 = vector.load %arg1[%c0_9, %c0_10, %c129] : memref<1x16x640xbf16, #tpu.memory_space<vmem>>, vector<1x16x384xbf16>
    %11 = vector.shape_cast %10 : vector<1x16x384xbf16> to vector<16x384xbf16>
    %c0_11 = arith.constant 0 : index
    %c0_12 = arith.constant 0 : index
    %c145 = arith.constant 145 : index
    %12 = vector.load %arg1[%c0_11, %c0_12, %c145] : memref<1x16x640xbf16, #tpu.memory_space<vmem>>, vector<1x16x384xbf16>
    %13 = vector.shape_cast %12 : vector<1x16x384xbf16> to vector<16x384xbf16>
    %c0_13 = arith.constant 0 : index
    %c0_14 = arith.constant 0 : index
    %c146 = arith.constant 146 : index
    %14 = vector.load %arg1[%c0_13, %c0_14, %c146] : memref<1x16x640xbf16, #tpu.memory_space<vmem>>, vector<1x16x384xbf16>
    %15 = vector.shape_cast %14 : vector<1x16x384xbf16> to vector<16x384xbf16>
    %c0_15 = arith.constant 0 : index
    %c0_16 = arith.constant 0 : index
    %c147 = arith.constant 147 : index
    %16 = vector.load %arg1[%c0_15, %c0_16, %c147] : memref<1x16x640xbf16, #tpu.memory_space<vmem>>, vector<1x16x384xbf16>
    %17 = vector.shape_cast %16 : vector<1x16x384xbf16> to vector<16x384xbf16>
    %18 = tpu.concatenate %1, %3, %5, %7, %9, %11, %13, %15, %17 in 0 : vector<16x384xbf16>, vector<16x384xbf16>, vector<16x384xbf16>, vector<16x384xbf16>, vector<16x384xbf16>, vector<16x384xbf16>, vector<16x384xbf16>, vector<16x384xbf16>, vector<16x384xbf16> -> vector<144x384xbf16>
    %c0_17 = arith.constant 0 : index
    %c0_18 = arith.constant 0 : index
    %19 = vector.load %arg3[%c0_17, %c0_18] : memref<16x144xbf16, #tpu.memory_space<vmem>>, vector<16x144xbf16>
    %cst = arith.constant dense<0.000000e+00> : vector<16x384xf32>
    %20 = tpu.matmul %19, %18, %cst {dimension_numbers = #tpu.dot_dimension_numbers<[1], [0], [0], [1], [0, 0, 1, 1], [], []>} : vector<16x144xbf16>, vector<144x384xbf16>, vector<16x384xf32> -> vector<16x384xf32>
    %c0_19 = arith.constant 0 : index
    %c0_20 = arith.constant 0 : index
    %21 = vector.load %arg4[%c0_19, %c0_20] : memref<16x1xf32, #tpu.memory_space<vmem>>, vector<16x1xf32>
    %22 = vector.broadcast %21 : vector<16x1xf32> to vector<16x384xf32>
    %23 = arith.mulf %20, %22 : vector<16x384xf32>
    %c0_21 = arith.constant 0 : index
    %c0_22 = arith.constant 0 : index
    %24 = vector.load %arg5[%c0_21, %c0_22] : memref<16x1xf32, #tpu.memory_space<vmem>>, vector<16x1xf32>
    %25 = vector.broadcast %24 : vector<16x1xf32> to vector<16x384xf32>
    %26 = arith.addf %23, %25 : vector<16x384xf32>
    %cst_23 = arith.constant 0.000000e+00 : f32
    %27 = vector.broadcast %cst_23 : f32 to vector<16x384xf32>
    %28 = arith.maximumf %26, %27 : vector<16x384xf32>
    %c0_24 = arith.constant 0 : index
    %c0_25 = arith.constant 0 : index
    %29 = vector.load %arg2[%c0_24, %c0_25] : memref<1x384xf32, #tpu.memory_space<vmem>>, vector<1x384xf32>
    %30 = vector.broadcast %29 : vector<1x384xf32> to vector<16x384xf32>
    %31 = arith.mulf %28, %30 : vector<16x384xf32>
    %32 = arith.truncf %31 : vector<16x384xf32> to vector<16x384xbf16>
    %cst_26 = arith.constant 0.000000e+00 : bf16
    %33 = vector.broadcast %cst_26 : bf16 to vector<16x128xbf16>
    %c0_27 = arith.constant 0 : index
    %c0_28 = arith.constant 0 : index
    %34 = vector.load %arg10[%c0_27, %c0_28] : memref<16x640xbf16, #tpu.memory_space<vmem>>, vector<16x128xbf16>
    tpu.vector_store %arg10[%c0_27, %c0_28], %33 {strides = array<i32>} : memref<16x640xbf16, #tpu.memory_space<vmem>>, vector<16x128xbf16>,
    %c0_29 = arith.constant 0 : index
    %c512 = arith.constant 512 : index
    %35 = vector.load %arg10[%c0_29, %c512] : memref<16x640xbf16, #tpu.memory_space<vmem>>, vector<16x128xbf16>
    tpu.vector_store %arg10[%c0_29, %c512], %33 {strides = array<i32>} : memref<16x640xbf16, #tpu.memory_space<vmem>>, vector<16x128xbf16>,
    %c0_30 = arith.constant 0 : index
    %c128_31 = arith.constant 128 : index
    %36 = vector.load %arg10[%c0_30, %c128_31] : memref<16x640xbf16, #tpu.memory_space<vmem>>, vector<16x384xbf16>
    tpu.vector_store %arg10[%c0_30, %c128_31], %32 {strides = array<i32>} : memref<16x640xbf16, #tpu.memory_space<vmem>>, vector<16x384xbf16>,
    %c0_32 = arith.constant 0 : index
    %c109_33 = arith.constant 109 : index
    %37 = vector.load %arg10[%c0_32, %c109_33] : memref<16x640xbf16, #tpu.memory_space<vmem>>, vector<16x384xbf16>
    %c0_34 = arith.constant 0 : index
    %c110_35 = arith.constant 110 : index
    %38 = vector.load %arg10[%c0_34, %c110_35] : memref<16x640xbf16, #tpu.memory_space<vmem>>, vector<16x384xbf16>
    %c0_36 = arith.constant 0 : index
    %c111_37 = arith.constant 111 : index
    %39 = vector.load %arg10[%c0_36, %c111_37] : memref<16x640xbf16, #tpu.memory_space<vmem>>, vector<16x384xbf16>
    %c0_38 = arith.constant 0 : index
    %c127_39 = arith.constant 127 : index
    %40 = vector.load %arg10[%c0_38, %c127_39] : memref<16x640xbf16, #tpu.memory_space<vmem>>, vector<16x384xbf16>
    %c0_40 = arith.constant 0 : index
    %c129_41 = arith.constant 129 : index
    %41 = vector.load %arg10[%c0_40, %c129_41] : memref<16x640xbf16, #tpu.memory_space<vmem>>, vector<16x384xbf16>
    %c0_42 = arith.constant 0 : index
    %c145_43 = arith.constant 145 : index
    %42 = vector.load %arg10[%c0_42, %c145_43] : memref<16x640xbf16, #tpu.memory_space<vmem>>, vector<16x384xbf16>
    %c0_44 = arith.constant 0 : index
    %c146_45 = arith.constant 146 : index
    %43 = vector.load %arg10[%c0_44, %c146_45] : memref<16x640xbf16, #tpu.memory_space<vmem>>, vector<16x384xbf16>
    %c0_46 = arith.constant 0 : index
    %c147_47 = arith.constant 147 : index
    %44 = vector.load %arg10[%c0_46, %c147_47] : memref<16x640xbf16, #tpu.memory_space<vmem>>, vector<16x384xbf16>
    %45 = tpu.concatenate %37, %38, %39, %40, %32, %41, %42, %43, %44 in 0 : vector<16x384xbf16>, vector<16x384xbf16>, vector<16x384xbf16>, vector<16x384xbf16>, vector<16x384xbf16>, vector<16x384xbf16>, vector<16x384xbf16>, vector<16x384xbf16>, vector<16x384xbf16> -> vector<144x384xbf16>
    %c0_48 = arith.constant 0 : index
    %c0_49 = arith.constant 0 : index
    %46 = vector.load %arg6[%c0_48, %c0_49] : memref<16x144xbf16, #tpu.memory_space<vmem>>, vector<16x144xbf16>
    %cst_50 = arith.constant dense<0.000000e+00> : vector<16x384xf32>
    %47 = tpu.matmul %46, %45, %cst_50 {dimension_numbers = #tpu.dot_dimension_numbers<[1], [0], [0], [1], [0, 0, 1, 1], [], []>} : vector<16x144xbf16>, vector<144x384xbf16>, vector<16x384xf32> -> vector<16x384xf32>
    %c0_51 = arith.constant 0 : index
    %c0_52 = arith.constant 0 : index
    %48 = vector.load %arg7[%c0_51, %c0_52] : memref<16x1xf32, #tpu.memory_space<vmem>>, vector<16x1xf32>
    %49 = vector.broadcast %48 : vector<16x1xf32> to vector<16x384xf32>
    %50 = arith.mulf %47, %49 : vector<16x384xf32>
    %c0_53 = arith.constant 0 : index
    %c0_54 = arith.constant 0 : index
    %51 = vector.load %arg8[%c0_53, %c0_54] : memref<16x1xf32, #tpu.memory_space<vmem>>, vector<16x1xf32>
    %52 = vector.broadcast %51 : vector<16x1xf32> to vector<16x384xf32>
    %53 = arith.addf %50, %52 : vector<16x384xf32>
    %c0_55 = arith.constant 0 : index
    %c0_56 = arith.constant 0 : index
    %c128_57 = arith.constant 128 : index
    %54 = vector.load %arg1[%c0_55, %c0_56, %c128_57] : memref<1x16x640xbf16, #tpu.memory_space<vmem>>, vector<1x16x384xbf16>
    %55 = vector.shape_cast %54 : vector<1x16x384xbf16> to vector<16x384xbf16>
    %56 = arith.extf %55 : vector<16x384xbf16> to vector<16x384xf32>
    %57 = arith.addf %53, %56 : vector<16x384xf32>
    %cst_58 = arith.constant 0.000000e+00 : f32
    %58 = vector.broadcast %cst_58 : f32 to vector<16x384xf32>
    %59 = arith.maximumf %57, %58 : vector<16x384xf32>
    %c0_59 = arith.constant 0 : index
    %c0_60 = arith.constant 0 : index
    %c0_61 = arith.constant 0 : index
    %60 = vector.load %arg9[%c0_59, %c0_60, %c0_61] : memref<1x16x384xf32, #tpu.memory_space<vmem>>, vector<1x16x384xf32>
    %61 = vector.shape_cast %60 : vector<1x16x384xf32> to vector<16x384xf32>
    %62 = vector.shape_cast %59 : vector<16x384xf32> to vector<1x16x384xf32>
    tpu.vector_store %arg9[%c0_59, %c0_60, %c0_61], %62 {strides = array<i32>} : memref<1x16x384xf32, #tpu.memory_space<vmem>>, vector<1x16x384xf32>,
    return
  }
  func.func @transform_0(%arg0: i32) -> (i32, i32, i32) {
    %c0_i32 = arith.constant 0 : i32
    %c0_i32_0 = arith.constant 0 : i32
    %c0_i32_1 = arith.constant 0 : i32
    return %arg0, %c0_i32, %c0_i32_0 : i32, i32, i32
  }
  func.func @transform_1(%arg0: i32) -> (i32, i32) {
    %c0_i32 = arith.constant 0 : i32
    %c0_i32_0 = arith.constant 0 : i32
    %c0_i32_1 = arith.constant 0 : i32
    return %c0_i32, %c0_i32_0 : i32, i32
  }
  func.func @transform_2(%arg0: i32) -> (i32, i32) {
    %c0_i32 = arith.constant 0 : i32
    %c0_i32_0 = arith.constant 0 : i32
    %c0_i32_1 = arith.constant 0 : i32
    return %c0_i32, %c0_i32_0 : i32, i32
  }
  func.func @transform_3(%arg0: i32) -> (i32, i32) {
    %c0_i32 = arith.constant 0 : i32
    %c0_i32_0 = arith.constant 0 : i32
    %c0_i32_1 = arith.constant 0 : i32
    return %c0_i32, %c0_i32_0 : i32, i32
  }
  func.func @transform_4(%arg0: i32) -> (i32, i32) {
    %c0_i32 = arith.constant 0 : i32
    %c0_i32_0 = arith.constant 0 : i32
    %c0_i32_1 = arith.constant 0 : i32
    return %c0_i32, %c0_i32_0 : i32, i32
  }
  func.func @transform_5(%arg0: i32) -> (i32, i32) {
    %c0_i32 = arith.constant 0 : i32
    %c0_i32_0 = arith.constant 0 : i32
    %c0_i32_1 = arith.constant 0 : i32
    return %c0_i32, %c0_i32_0 : i32, i32
  }
  func.func @transform_6(%arg0: i32) -> (i32, i32) {
    %c0_i32 = arith.constant 0 : i32
    %c0_i32_0 = arith.constant 0 : i32
    %c0_i32_1 = arith.constant 0 : i32
    return %c0_i32, %c0_i32_0 : i32, i32
  }
  func.func @transform_7(%arg0: i32) -> (i32, i32) {
    %c0_i32 = arith.constant 0 : i32
    %c0_i32_0 = arith.constant 0 : i32
    %c0_i32_1 = arith.constant 0 : i32
    return %c0_i32, %c0_i32_0 : i32, i32
  }
  func.func @transform_8(%arg0: i32) -> (i32, i32, i32) {
    %c0_i32 = arith.constant 0 : i32
    %c0_i32_0 = arith.constant 0 : i32
    %c0_i32_1 = arith.constant 0 : i32
    return %arg0, %c0_i32, %c0_i32_0 : i32, i32, i32
  }
}

</mosaic_0001>

<bundles_post_ra>
// kernel: tpu_custom_call.1
= control target key start
LH: loop header
LB: loop body
LE: loop exit
PB: predicated region body
PF: predicated region fallthrough
CT: control target
= control target key end

     0   :  { %13 = vsyncpa [#allocation4], 0  ;;  %s2182_s0 = inlined_call_operand.hbm [shape: bf16[2,16,640], index: 0, kind: input, shape index: {}]   ;;  %s2183_s1 = inlined_call_operand.vmem [shape: f32[1,384], index: 1, kind: input, shape index: {}]   ;;  %s2184_s2 = inlined_call_operand.vmem [shape: bf16[16,144], index: 2, kind: input, shape index: {}]   ;;  %s2185_s3 = inlined_call_operand.vmem [shape: f32[16,1], index: 3, kind: input, shape index: {}]   ;;  %s2186_s4 = inlined_call_operand.vmem [shape: f32[16,1], index: 4, kind: input, shape index: {}]   ;;  %s2187_s5 = inlined_call_operand.vmem [shape: bf16[16,144], index: 5, kind: input, shape index: {}]   ;;  %s2188_s6 = inlined_call_operand.vmem [shape: f32[16,1], index: 6, kind: input, shape index: {}]   ;;  %s2189_s7 = inlined_call_operand.vmem [shape: f32[16,1], index: 7, kind: input, shape index: {}]   ;;  %s2190_s8 = inlined_call_operand.hbm [shape: f32[2,16,384], index: 8, kind: output, shape index: {}]  }
   0x1   :  { %15 = vsyncpa [#allocation4 + $0x1], 0 }
   0x2   :  { %16 = vsyncpa [#allocation5], 0 }
   0x3   :  { %18 = vsyncpa [#allocation5 + $0x1], 0  ;;  %s1640_s27 = smov 0   ;;  %s1642_s28 = smov 0  }
   0x4   :  { %s1644_s29 = smov 0   ;;  %s1646_s30 = smov 0  }
   0x5 LB: > { %2200 = sst [smem:[#allocation9_spill]] %s1575_s29  ;;  %s1661_s9 = sadd.s32 4294967295, %s1579_s30   ;;  %s1579_s30 = sphi %s1646_s30, %s2210_s30   ;;  %s1575_s29 = sphi %s1644_s29, %s2212_s29   ;;  %s1571_s28 = sphi %s1642_s28, %s2214_s28   ;;  %s1567_s27 = sphi %s1640_s27, %s2213_s27  }
   0x6   : > { %s1286_s10 = sadd.s32 4294967294, %s1579_s30   ;;  %s1665_s11 = sadd.s32 1, %s1579_s30  }
   0x7   : > { %2201 = sst [smem:[#allocation10_spill]] %s1665_s11  ;;  %s31_s12 = sadd.s32 1, %s1575_s29 }
   0x8   : > { %s28_s13 = ssub.s32 %s1579_s30, %s1665_s11  ;;  %p38_p0 = scmp.ne.s32.totalorder %s1575_s29, %s1571_s28 }
   0x9   : > { %p29_p1 = scmp.eq.s32.totalorder %s28_s13, 0  ;;  %p39_p2 = scmp.eq.s32.totalorder %s1579_s30, 0 }
   0xa   : > { %p44_p3 = scmp.ne.s32.totalorder %s1571_s28, %s1567_s27  ;;  %p45_p4 = scmp.eq.s32.totalorder %s1661_s9, 0 }
   0xb   : > { %s1677_s14 = scalar_select %p29_p1, %s1575_s29, %s31_s12  }
   0xc   : > { %p40_p5 = por %p39_p2, %p38_p0  ;;  %p1679_p6 = por %p45_p4, %p44_p3 }
   0xd   : > { %2202 = sst [smem:[#allocation11_spill]] %s1677_s14  ;;  %p215_p7 = scmp.eq.s32.totalorder %s1661_s9, 1 }
   0xe   : > { %p221_p8 = scmp.eq.s32.totalorder %s1286_s10, 1  ;;  %p1288_p9 = scmp.ge.s32.totalorder %s1579_s30, 2 }
   0xf   : > { %p1432_p10 = scmp.lt.s32.totalorder %s1579_s30, 2  ;;  %p1686_p11 = por %p215_p7, %p38_p0 }
  0x10   : > { %p1690_p12 = por %p221_p8, %p44_p3  ;;  %s262_s18 = sand.u32 1, %s1575_s29  }
  0x11   : > { %s1416_s19 = smul.u32 40, %s1579_s30  ;;  %p1699_p13 = pnand %p1432_p10, %p40_p5 }
  0x12   : > { %s1415_s20 = smul.u32 40, %s262_s18  ;;  %s263_s12 = scalar_lea.sflag [#allocation4], %s262_s18 }
  0x13   : > { %s271_s23 = scalar_lea.hbm %s2182_s0, %s1416_s19  ;;  %p1487_p1 = pneg %p1699_p13 }
  0x14   : > { %s272_s25 = sshll.u32 %s271_s23, 4  ;;  %s266_s26 = scalar_lea.vmem [#allocation3], %s1415_s20  ;;  %s273_s25 = int_to_ptr.hbm [resolvable:$true] %s272_s25 }
  0x15   : > { %s274_s10 = sshll.u32 %s266_s26, 4  ;;  %s1483_s13 = sshra.s32 %s273_s25, 4  ;;  %s275_s10 = int_to_ptr.vmem [resolvable:$true] %s274_s10  ;;  %s1484_s13 = int_to_ptr.hbm [resolvable:$true] %s1483_s13 }
  0x16   : > { %s1485_s14 = scalar_lea.hbm %s1484_s13, 40  ;;  %s1490_s22 = scalar_lea.hbm %s2182_s0, 80 }
  0x17   : > { %p1486_p0 = scmp.ne.s32.totalorder %s1484_s13, %s1485_s14  ;;  %p1491_p4 = scmp.lt.s32.totalorder %s1484_s13, %s2182_s0 }
  0x18   : > { %p1492_p5 = scmp.lt.s32.totalorder %s1490_s22, %s1485_s14 }
  0x19   : > { %p1488_p2 = pnand %p1487_p1, %p1486_p0 }
  0x1a   : > { %p1493_p7 = por %p1492_p5, %p1491_p4 }
  0x1b   : > { %p1489_p3 = pneg %p1488_p2 }
  0x1d   : > { %p1494_p8 = pnand %p1493_p7, %p1489_p3 }
  0x1f   : > { %1497 = shalt.err (!%p1494_p8)
}
  0x20   : > { %s1581_s18 = smov 320   ;;  %s1582_s20 = smov 20  }
  0x21   : > { %1427 = dma.hbm_to_vmem [thread:$0]  (!%p1699_p13), %s273_s25, 640, %s275_s10, %s263_s12, %s1581_s18, %s1581_s18, %s1582_s20  }
  0x22   : > { %p1290_p10 = scmp.ge.s32.totalorder %s1579_s30, 1  ;;  %p282_p0 = scmp.lt.s32.totalorder %s1579_s30, 3 }
  0x24   : > { %p283_p1 = pnand %p1290_p10, %p282_p0 }
  0x25   : > { %s1716_s23 = sand.u32 (!%p283_p1), 1, %s1571_s28  }
  0x26   : > { %286 = sbr.rel (%p283_p1) target bundleno = 1032 (0x408), region = 52  ;;  %s289_s11 = scalar_lea.sflag (!%p283_p1), [#allocation4], %s1716_s23 }
  0x27   : > { %s1417_s29 = smul.u32 (!%p283_p1), 40, %s1716_s23 }
  0x29   : > { %s1720_s14 = scalar_lea.vmem (!%p283_p1), [#allocation3], %s1417_s29 }
  0x2b   : > { %1558 = dma.done.wait (%p1679_p6), %s289_s11, 640  }
  0x2c   : > { %1560 = vsyncadd (%p1679_p6), %s289_s11, 4294966656  ;;  %v1329_v0 = vld [vmem:[%s1720_s14 + $0xc] sm:$0xf]  ;;  %v1402_v1 = vld [vmem:[%s1720_s14 + $0x1c] sm:$0xf0]  ;;  %s1583_s15 = smov 91  }
  0x2d   : > { %v1321_v2 = vld [vmem:[%s1720_s14 + $0x4] sm:$0xf]  ;;  %v1729_v3 = vor.u32 %v1402_v1, %v1329_v0  ;;  %v1401_v4 = vld [vmem:[%s1720_s14 + $0x14] sm:$0xf0]  ;;  %v1399_v5 = vld [vmem:[%s1720_s14 + $0x8] sm:$0xf] }
  0x2e   : > { %v1323_v6 = vld [vmem:[%s1720_s14 + $0x18] sm:$0xf0]  ;;  %v1322_v7 = vor.u32 %v1401_v4, %v1321_v2  ;;  %s1584_s24 = smov 92   ;;  %s2198_s25 = smov 108   ;;  %v1317_v9 = vld [vmem:[%s1720_s14 + $0xc] sm:$0xf] }
  0x2f   : > { %v1326_v8 = vor.u32 %v1399_v5, %v1323_v6  ;;  %457 = vrot.lane.b32.xlu1 %v1729_v3, %s1583_s15  ;;  %v1396_v10 = vld [vmem:[%s1720_s14 + $0x8] sm:$0xf]  ;;  %v1311_v11 = vld [vmem:[%s1720_s14 + $0x18] sm:$0xf0]  ;;  %v1398_v12 = vld [vmem:[%s1720_s14 + $0x1c] sm:$0xf0] }
  0x30   : > { %453 = vrot.lane.b32.xlu0 %v1322_v7, %s1583_s15  ;;  %v1309_v13 = vld [vmem:[%s1720_s14 + $0x4] sm:$0xf]  ;;  %v1397_v14 = vld [vmem:[%s1720_s14 + $0x14] sm:$0xf0]  ;;  %v1314_v15 = vor.u32 %v1396_v10, %v1311_v11  ;;  %v1318_v16 = vor.u32 %v1398_v12, %v1317_v9  ;;  %s2194_s26 = smov 109   ;;  %s1587_s10 = smov 110  }
  0x31   : > { %443 = vrot.lane.b32.xlu2 %v1326_v8, %s1584_s24  ;;  %v1310_v17 = vor.u32 %v1397_v14, %v1309_v13  ;;  %v1301_v18 = vld [vmem:[%s1720_s14 + $0x8] sm:$0xf]  ;;  %v1395_v19 = vld [vmem:[%s1720_s14 + $0x18] sm:$0xf0]  ;;  %v1393_v20 = vld [vmem:[%s1720_s14 + $0xc] sm:$0xf] }
  0x32   : > { %v1303_v21 = vld [vmem:[%s1720_s14 + $0x1c] sm:$0xf0]  ;;  %v1392_v22 = vld [vmem:[%s1720_s14 + $0x4] sm:$0xf]  ;;  %v1295_v23 = vld [vmem:[%s1720_s14 + $0x14] sm:$0xf0]  ;;  %v1761_v24 = vor.u32 %v1395_v19, %v1301_v18 }
  0x33   : > { %v1763_v25 = vor.u32 %v1393_v20, %v1303_v21  ;;  %v1765_v26 = vor.u32 %v1392_v22, %v1295_v23  ;;  %s1588_s12 = smov 126   ;;  %v1400_v27 = vld [vmem:[%s1720_s14 + $0x10] sm:$0xf]  ;;  %v1331_v28 = vld [vmem:[%s1720_s14 + $0x20] sm:$0xf0]  ;;  %s1589_s13 = smov 127  }
  0x34   : > { %v1293_v29 = vld [vmem:[%s1720_s14] sm:$0xf]  ;;  %v1394_v30 = vld [vmem:[%s1720_s14 + $0x10] sm:$0xf0]  ;;  %v1334_v31 = vor.u32 %v1400_v27, %v1331_v28  ;;  %s1590_s19 = smov 90   ;;  %s2196_s21 = smov 19  }
  0x35   : > { %v1783_v32 = vor.u32 %v1394_v30, %v1293_v29  ;;  %vm461_vm0 = vcmask 744448   ;;  %vm449_vm1 = vcmask 752640   ;;  %vm437_vm2 = vcmask 883712   ;;  %s2208_s22 = smov 19   ;;  %s2209_s18 = smov 109  }
  0x36   : > { %vm410_vm3 = vcmask 891904   ;;  %vm387_vm4 = vcmask 900096   ;;  %vm375_vm5 = vcmask 1031168   ;;  %vm363_vm6 = vcmask 1039360   ;;  %s1198_s11 = scalar_lea.sflag [#allocation5], %s1716_s23 }
  0x37   : > { %441 = vrot.lane.b32.xlu1 %v1322_v7, %s1584_s24  ;;  %vm473_vm7 = vcmask 736256   ;;  %vm560_vm8 = vcmask 154624   ;;  %vm615_vm9 = vcmask 130048  }
  0x38   : > { %455 = vrot.lane.b32.xlu0 %v1326_v8, %s1583_s15 }
  0x39   : > { %445 = vrot.lane.b32.xlu2 %v1729_v3, %s1584_s24 }
  0x3f   : > { %431 = vrot.lane.b32.xlu1 %v1326_v8, %s2198_s25 }
  0x40   : > { %429 = vrot.lane.b32.xlu0 %v1322_v7, %s2198_s25 }
  0x41   : > { %433 = vrot.lane.b32.xlu2 %v1729_v3, %s2198_s25 }
  0x47   : > { %406 = vrot.lane.b32.xlu1 %v1314_v15, %s2194_s26 }
  0x48   : > { %404 = vrot.lane.b32.xlu0 %v1310_v17, %s2194_s26 }
  0x49   : > { %408 = vrot.lane.b32.xlu2 %v1318_v16, %s2194_s26  ;;  %s2207_s26 = smov 108  }
  0x4f   : > { %383 = vrot.lane.b32.xlu1 %v1761_v24, %s1587_s10 }
  0x50   : > { %381 = vrot.lane.b32.xlu0 %v1765_v26, %s1587_s10 }
  0x51   : > { %385 = vrot.lane.b32.xlu2 %v1763_v25, %s1587_s10 }
  0x57   : > { %371 = vrot.lane.b32.xlu1 %v1761_v24, %s1588_s12 }
  0x58   : > { %369 = vrot.lane.b32.xlu0 %v1765_v26, %s1588_s12 }
  0x59   : > { %373 = vrot.lane.b32.xlu2 %v1763_v25, %s1588_s12 }
  0x5f   : > { %459 = vrot.lane.b32.xlu1 %v1334_v31, %s1583_s15 }
  0x60   : > { %379 = vrot.lane.b32.xlu0 %v1783_v32, %s1587_s10 }
  0x61   : > { %357 = vrot.lane.b32.xlu2 %v1765_v26, %s1589_s13 }
  0x67   : > { %361 = vrot.lane.b32.xlu1 %v1763_v25, %s1589_s13 }
  0x68   : > { %359 = vrot.lane.b32.xlu0 %v1761_v24, %s1589_s13 }
  0x69   : > { %367 = vrot.lane.b32.xlu2 %v1783_v32, %s1588_s12 }
  0x6f   : > { %465 = vrot.lane.b32.xlu1 %v1322_v7, %s1590_s19 }
  0x70   : > { %447 = vrot.lane.b32.xlu0 %v1334_v31, %s1584_s24 }
  0x71   : > { %467 = vrot.lane.b32.xlu2 %v1326_v8, %s1590_s19 }
  0x77   : > { %355 = vrot.lane.b32.xlu1 %v1783_v32, %s1589_s13 }
  0x78   : > { %469 = vrot.lane.b32.xlu0 %v1729_v3, %s1590_s19 }
  0x79   : > { %435 = vrot.lane.b32.xlu2 %v1334_v31, %s2198_s25 }
  0x81   : > { %471 = vrot.lane.b32.xlu2 %v1334_v31, %s1590_s19 }
  0x8b   : > { %v444_v33 = vpop.permute.xlu2 %443 }
  0x93   : > { %v1805_v34 = vpop.permute.xlu2 %445 }
  0x94   : > { %v451_v44 = vsel %vm449_vm1, %v444_v33, %v1805_v34 }
  0x9b   : > { %v1808_v38 = vpop.permute.xlu2 %433 }
  0xa1   : > { %v458_v35 = vpop.permute.xlu1 %457 }
  0xa2   : > { %v454_v36 = vpop.permute.xlu0 %453 }
  0xa3   : > { %544 = vrot.lane.b32.xlu2 %v454_v36, %s2196_s21  ;;  %v1819_v46 = vpop.permute.xlu2 %408 }
  0xa9   : > { %v442_v37 = vpop.permute.xlu1 %441 }
  0xaa   : > { %v456_v39 = vpop.permute.xlu0 %455  ;;  %v450_v45 = vsel %vm449_vm1, %v442_v37, %v444_v33 }
  0xab   : > { %536 = vrot.lane.b32.xlu2 %v442_v37, %s2196_s21  ;;  %v463_v40 = vsel %vm461_vm0, %v456_v39, %v458_v35  ;;  %v462_v41 = vsel %vm461_vm0, %v454_v36, %v456_v39  ;;  %v386_v51 = vpop.permute.xlu2 %385 }
  0xac   : > { %548 = vrot.lane.b32.xlu1 %v463_v40, %s2196_s21  ;;  %546 = vrot.lane.b32.xlu0 %v462_v41, %s2196_s21 }
  0xb1   : > { %v432_v42 = vpop.permute.xlu1 %431 }
  0xb2   : > { %v430_v43 = vpop.permute.xlu0 %429  ;;  %v439_v48 = vsel %vm437_vm2, %v432_v42, %v1808_v38 }
  0xb3   : > { %528 = vrot.lane.b32.xlu2 %v430_v43, %s2196_s21  ;;  %v438_v50 = vsel %vm437_vm2, %v430_v43, %v432_v42  ;;  %v374_v56 = vpop.permute.xlu2 %373 }
  0xb4   : > { %540 = vrot.lane.b32.xlu1 %v451_v44, %s2196_s21  ;;  %538 = vrot.lane.b32.xlu0 %v450_v45, %s2196_s21 }
  0xb9   : > { %v407_v47 = vpop.permute.xlu1 %406 }
  0xba   : > { %v405_v49 = vpop.permute.xlu0 %404  ;;  %v412_v53 = vsel %vm410_vm3, %v407_v47, %v1819_v46 }
  0xbb   : > { %520 = vrot.lane.b32.xlu2 %v405_v49, %s2196_s21  ;;  %v411_v55 = vsel %vm410_vm3, %v405_v49, %v407_v47  ;;  %v358_v63 = vpop.permute.xlu2 %357 }
  0xbc   : > { %532 = vrot.lane.b32.xlu1 %v439_v48, %s2196_s21  ;;  %530 = vrot.lane.b32.xlu0 %v438_v50, %s2196_s21 }
  0xc1   : > { %v384_v52 = vpop.permute.xlu1 %383 }
  0xc2   : > { %v382_v54 = vpop.permute.xlu0 %381  ;;  %v390_v58 = vsel %vm387_vm4, %v384_v52, %v386_v51 }
  0xc3   : > { %v389_v60 = vsel %vm387_vm4, %v382_v54, %v384_v52  ;;  %v368_v8 = vpop.permute.xlu2 %367 }
  0xc4   : > { %524 = vrot.lane.b32.xlu1 %v412_v53, %s2196_s21  ;;  %522 = vrot.lane.b32.xlu0 %v411_v55, %s2196_s21 }
  0xc9   : > { %v372_v57 = vpop.permute.xlu1 %371 }
  0xca   : > { %v370_v59 = vpop.permute.xlu0 %369  ;;  %v378_v62 = vsel %vm375_vm5, %v372_v57, %v374_v56 }
  0xcb   : > { %v377_v1 = vsel %vm375_vm5, %v370_v59, %v372_v57  ;;  %v376_v10 = vsel %vm375_vm5, %v368_v8, %v370_v59  ;;  %v468_v12 = vpop.permute.xlu2 %467  ;;  %v1337_v59 = vld [vmem:[%s2184_s2] sm:$0xf] }
  0xcc   : > { %516 = vrot.lane.b32.xlu1 %v390_v58, %s2196_s21  ;;  %514 = vrot.lane.b32.xlu0 %v389_v60, %s2196_s21  ;;  %v1404_v60 = vld [vmem:[%s2184_s2 + $0x4] sm:$0xf0] }
  0xd1   : > { %v460_v61 = vpop.permute.xlu1 %459 }
  0xd2   : > { %v380_v0 = vpop.permute.xlu0 %379  ;;  %v464_v5 = vsel %vm461_vm0, %v458_v35, %v460_v61  ;;  %v1403_v61 = vld [vmem:[%s2184_s2 + $0x4] sm:$0xf] }
  0xd3   : > { %v388_v2 = vsel %vm387_vm4, %v380_v0, %v382_v54  ;;  %v436_v17 = vpop.permute.xlu2 %435 }
  0xd4   : > { %508 = vrot.lane.b32.xlu1 %v378_v62, %s2196_s21  ;;  %506 = vrot.lane.b32.xlu0 %v377_v1, %s2196_s21  ;;  %v440_v20 = vsel %vm437_vm2, %v1808_v38, %v436_v17  ;;  %v1339_v62 = vld [vmem:[%s2184_s2 + $0x8] sm:$0xf0] }
  0xd5   : > { %512 = vrot.lane.b32.xlu2 %v388_v2, %s2196_s21 }
  0xd9   : > { %v362_v3 = vpop.permute.xlu1 %361 }
  0xda   : > { %v360_v4 = vpop.permute.xlu0 %359 }
  0xdb   : > { %v366_v6 = vsel %vm363_vm6, %v360_v4, %v362_v3  ;;  %v365_v7 = vsel %vm363_vm6, %v358_v63, %v360_v4  ;;  %v472_v21 = vpop.permute.xlu2 %471  ;;  %v1338_v4 = vor.u32 %v1404_v60, %v1337_v59 }
  0xdc   : > { %550 = vrot.lane.b32.xlu0 %v464_v5, %s2196_s21  ;;  %498 = vrot.lane.b32.xlu1 %v365_v7, %s2196_s21  ;;  %v1342_v5 = vor.u32 %v1403_v61, %v1339_v62 }
  0xdd   : > { %500 = vrot.lane.b32.xlu2 %v366_v6, %s2196_s21  ;;  %v703_v6 = vld [vmem:[%s2185_s3] sm:$0xff] }
  0xe1   : > { %v466_v13 = vpop.permute.xlu1 %465 }
  0xe2   : > { %v448_v9 = vpop.permute.xlu0 %447  ;;  %v474_v14 = vsel %vm473_vm7, %v466_v13, %v468_v12 }
  0xe3   : > { %v452_v11 = vsel %vm449_vm1, %v1805_v34, %v448_v9  ;;  %v1592_v9 = vmov 0  }
  0xe4   : > { %504 = vrot.lane.b32.xlu0 %v376_v10, %s2196_s21  ;;  %542 = vrot.lane.b32.xlu1 %v452_v11, %s2196_s21  ;;  %763 = vst [vmem:[#allocation2] sm:$0xf] %v1592_v9 }
  0xe5   : > { %490 = vrot.lane.b32.xlu2 %v1765_v26, %s2196_s21  ;;  %1480 = vset.pattern.permute.xlu1 %v1592_v9  ;;  %764 = vst [vmem:[#allocation2 + $0x14] sm:$0xf] %v1592_v9 }
  0xe6   : > { %1482 = vset.pattern.permute.xlu0 %v1592_v9  ;;  %1481 = vset.pattern.permute.xlu2 %v1592_v9  ;;  %765 = vst [vmem:[#allocation2 + $0x10] sm:$0xf] %v1592_v9 }
  0xe7   : > { %766 = vst [vmem:[#allocation2 + $0x24] sm:$0xf] %v1592_v9 }
  0xe9   : > { %v356_v18 = vpop.permute.xlu1 %355 }
  0xea   : > { %v470_v15 = vpop.permute.xlu0 %469  ;;  %v364_v19 = vsel %vm363_vm6, %v356_v18, %v358_v63  ;;  %v704_v18 = vld [vmem:[%s2185_s3 + $0x8] sm:$0xff] }
  0xeb   : > { %v475_v16 = vsel %vm473_vm7, %v468_v12, %v470_v15  ;;  %v476_v22 = vsel %vm473_vm7, %v470_v15, %v472_v21 }
  0xec   : > { %492 = vrot.lane.b32.xlu0 %v1761_v24, %s2196_s21  ;;  %554 = vrot.lane.b32.xlu1 %v474_v14, %s2196_s21  ;;  %v722_v14 = vld [vmem:[%s2186_s4 + $0x8] sm:$0xff] }
  0xed   : > { %556 = vrot.lane.b32.xlu2 %v475_v16, %s2196_s21 }
  0xf4   : > { %496 = vrot.lane.b32.xlu0 %v364_v19, %s2196_s21  ;;  %534 = vrot.lane.b32.xlu1 %v440_v20, %s2196_s21 }
  0xf5   : > { %488 = vrot.lane.b32.xlu2 %v1783_v32, %s2196_s21 }
  0xfc   : > { %526 = vrot.lane.b32.xlu0 %v1819_v46, %s2196_s21  ;;  %552 = vrot.lane.b32.xlu1 %v466_v13, %s2196_s21  ;;  %v721_v13 = vld [vmem:[%s2186_s4] sm:$0xff] }
  0xfd   : > { %518 = vrot.lane.b32.xlu2 %v386_v51, %s2196_s21  ;;  %v545_v23 = vpop.permute.xlu2 %544 }
 0x104   : > { %510 = vrot.lane.b32.xlu0 %v374_v56, %s2196_s21  ;;  %558 = vrot.lane.b32.xlu1 %v476_v22, %s2196_s21 }
 0x105   : > { %502 = vrot.lane.b32.xlu2 %v362_v3, %s2196_s21  ;;  %v537_v29 = vpop.permute.xlu2 %536 }
 0x10c   : > { %494 = vrot.lane.b32.xlu0 %v1763_v25, %s2196_s21  ;;  %707 = vperm.xlu1 %1480, %v703_v6  }
 0x10d   : > { %v529_v33 = vpop.permute.xlu2 %528  ;;  %712 = vperm.xlu2 %1481, %v704_v18  }
 0x114   : > { %725 = vperm.xlu0 %1482, %v721_v13   ;;  %730 = vperm.xlu1 %1480, %v722_v14  }
 0x115   : > { %v521_v38 = vpop.permute.xlu2 %520 }
 0x11e   : > { %v1880_v24 = vpop.permute.xlu1 %548  ;;  %v547_v26 = vpop.permute.xlu0 %546 }
 0x11f   : > { %v582_v27 = vsel %vm560_vm8, %v545_v23, %v547_v26  ;;  %v583_v28 = vsel %vm560_vm8, %v547_v26, %v1880_v24 }
 0x120   : > { %619 = vmatpush.bf16.msra.mxu0 %v582_v27  ;;  %647 = vmatpush.bf16.msra.mxu2 %v583_v28 }
 0x126   : > { %v1885_v30 = vpop.permute.xlu1 %540  ;;  %v539_v31 = vpop.permute.xlu0 %538 }
 0x127   : > { %v579_v32 = vsel %vm560_vm8, %v537_v29, %v539_v31  ;;  %v580_v25 = vsel %vm560_vm8, %v539_v31, %v1885_v30 }
 0x128   : > { %620 = vmatpush.bf16.msra.mxu0 %v579_v32  ;;  %648 = vmatpush.bf16.msra.mxu2 %v580_v25 }
 0x12e   : > { %v1890_v34 = vpop.permute.xlu1 %532  ;;  %v531_v35 = vpop.permute.xlu0 %530 }
 0x12f   : > { %v576_v36 = vsel %vm560_vm8, %v529_v33, %v531_v35  ;;  %v577_v37 = vsel %vm560_vm8, %v531_v35, %v1890_v34  ;;  %v513_v43 = vpop.permute.xlu2 %512  ;;  %v1348_v33 = vld [vmem:[#allocation2] sm:$0xf] }
 0x130   : > { %621 = vmatpush.bf16.msra.mxu0 %v576_v36  ;;  %649 = vmatpush.bf16.msra.mxu2 %v577_v37  ;;  %v1410_v36 = vld [vmem:[#allocation2 + $0x10] sm:$0xf]  ;;  %v1374_v37 = vld [vmem:[#allocation2 + $0x20] sm:$0xf0] }
 0x136   : > { %v1895_v39 = vpop.permute.xlu1 %524  ;;  %v523_v40 = vpop.permute.xlu0 %522 }
 0x137   : > { %v573_v41 = vsel %vm560_vm8, %v521_v38, %v523_v40  ;;  %v574_v42 = vsel %vm560_vm8, %v523_v40, %v1895_v39  ;;  %v1909_v51 = vpop.permute.xlu2 %500  ;;  %v1377_v38 = vor.u32 %v1410_v36, %v1374_v37 }
 0x138   : > { %622 = vmatpush.bf16.msra.mxu0 %v573_v41  ;;  %650 = vmatpush.bf16.msra.mxu2 %v574_v42 }
 0x139   : > { %893 = vrot.lane.b32.xlu1 %v1377_v38, %s1583_s15 }
 0x13e   : > { %v1900_v44 = vpop.permute.xlu1 %516  ;;  %v515_v45 = vpop.permute.xlu0 %514 }
 0x13f   : > { %v570_v46 = vsel %vm560_vm8, %v513_v43, %v515_v45  ;;  %v571_v47 = vsel %vm560_vm8, %v515_v45, %v1900_v44  ;;  %v491_v55 = vpop.permute.xlu2 %490 }
 0x140   : > { %623 = vmatpush.bf16.msra.mxu0 %v570_v46  ;;  %651 = vmatpush.bf16.msra.mxu2 %v571_v47 }
 0x146   : > { %v1905_v48 = vpop.permute.xlu1 %508  ;;  %v507_v49 = vpop.permute.xlu0 %506 }
 0x147   : > { %v568_v50 = vsel %vm560_vm8, %v507_v49, %v1905_v48  ;;  %v557_v63 = vpop.permute.xlu2 %556 }
 0x148   : > { %652 = vmatpush.bf16.msra.mxu2 %v568_v50 }
 0x14e   : > { %v499_v52 = vpop.permute.xlu1 %498  ;;  %v551_v53 = vpop.permute.xlu0 %550 }
 0x14f   : > { %v565_v54 = vsel %vm560_vm8, %v499_v52, %v1909_v51  ;;  %v489_v11 = vpop.permute.xlu2 %488  ;;  %v584_v17 = vsel %vm560_vm8, %v1880_v24, %v551_v53 }
 0x150   : > { %653 = vmatpush.bf16.msra.mxu2 %v565_v54  ;;  %v561_v12 = vsel %vm560_vm8, %v489_v11, %v491_v55 }
 0x156   : > { %v543_v56 = vpop.permute.xlu1 %542  ;;  %v505_v57 = vpop.permute.xlu0 %504 }
 0x157   : > { %v567_v58 = vsel %vm560_vm8, %v505_v57, %v507_v49  ;;  %v581_v19 = vsel %vm560_vm8, %v1885_v30, %v543_v56  ;;  %v519_v24 = vpop.permute.xlu2 %518 }
 0x158   : > { %624 = vmatpush.bf16.msra.mxu0 %v567_v58  ;;  %v572_v28 = vsel %vm560_vm8, %v1900_v44, %v519_v24 }
 0x15e   : > { %v555_v0 = vpop.permute.xlu1 %554  ;;  %v493_v1 = vpop.permute.xlu0 %492 }
 0x15f   : > { %v586_v2 = vsel %vm560_vm8, %v555_v0, %v557_v63  ;;  %v562_v3 = vsel %vm560_vm8, %v491_v55, %v493_v1  ;;  %v503_v30 = vpop.permute.xlu2 %502 }
 0x160   : > { %668 = vmatpush.bf16.msra.mxu3 %v586_v2  ;;  %654 = vmatpush.bf16.msra.mxu2 %v562_v3  ;;  %v566_v31 = vsel %vm560_vm8, %v1909_v51, %v503_v30 }
 0x163   : > { %655 = vmatmul.bf16.vlgmr.msra.gmra.mxu2 %v1338_v4  ;;  %1344 = vmatmul.msk.bf16.vlgmr.msra.gmra.mxu3 %vm615_vm9, %v1342_v5 }
 0x166   : > { %v535_v7 = vpop.permute.xlu1 %534  ;;  %v497_v8 = vpop.permute.xlu0 %496 }
 0x167   : > { %v564_v10 = vsel %vm560_vm8, %v497_v8, %v499_v52  ;;  %v578_v23 = vsel %vm560_vm8, %v1890_v34, %v535_v7  ;;  %v1407_v34 = vld [vmem:[#allocation2 + $0x10] sm:$0xf0]  ;;  %v713_v51 = vpop.permute.xlu2 %712  ;;  %v745_v52 = vld [vmem:[%s2183_s1] sm:$0x7] }
 0x168   : > { %625 = vmatpush.bf16.msra.mxu0 %v564_v10  ;;  %v1349_v35 = vor.u32 %v1407_v34, %v1348_v33  ;;  %v748_v56 = vperm.slane %v745_v52, 1  ;;  %v747_v59 = vperm.slane %v745_v52, 0 }
 0x16a   : > { %806 = vrot.lane.b32.xlu0 %v1349_v35, %s1588_s12  ;;  %817 = vrot.lane.b32.xlu2 %v1349_v35, %s1587_s10 }
 0x16c   : > { %626 = vmatpush.bf16.msra.mxu0 %v561_v12 }
 0x16e   : > { %v553_v15 = vpop.permute.xlu1 %552  ;;  %v527_v20 = vpop.permute.xlu0 %526 }
 0x16f   : > { %v585_v16 = vsel %vm560_vm8, %v553_v15, %v555_v0  ;;  %627 = vmatmul.bf16.vlgmr.msra.gmra.mxu0 %v1338_v4  ;;  %v575_v26 = vsel %vm560_vm8, %v1895_v39, %v527_v20  ;;  %v749_v20 = vperm.slane %v745_v52, 2 }
 0x170   : > { %640 = vmatpush.bf16.msra.mxu1 %v585_v16 }
 0x172   : > { %882 = vrot.lane.b32.xlu0 %v1377_v38, %s1584_s24  ;;  %795 = vrot.lane.b32.xlu2 %v1349_v35, %s1589_s13 }
 0x173   : > { %1343 = vmatmul.msk.bf16.vlgmr.msra.gmra.mxu1 %vm615_vm9, %v1342_v5 }
 0x174   : > { %675 = vmatpush.bf16.msrb.mxu1 %v584_v17 }
 0x176   : > { %v559_v21 = vpop.permute.xlu1 %558  ;;  %v511_v27 = vpop.permute.xlu0 %510 }
 0x177   : > { %v587_v22 = vsel %vm560_vm8, %v557_v63, %v559_v21  ;;  %v569_v29 = vsel %vm560_vm8, %v1905_v48, %v511_v27 }
 0x178   : > { %676 = vmatpush.bf16.msrb.mxu1 %v581_v19  ;;  %696 = vmatpush.bf16.msrb.mxu3 %v587_v22 }
 0x17a   : > { %904 = vrot.lane.b32.xlu0 %v1377_v38, %s1590_s19  ;;  %871 = vrot.lane.b32.xlu2 %v1377_v38, %s2207_s26 }
 0x17b   : > { %1345 = vmatmul.msk.bf16.vlgmr.msrb.gmra.mxu3 %vm615_vm9, %v1342_v5 }
 0x17c   : > { %677 = vmatpush.bf16.msrb.mxu1 %v578_v23 }
 0x17e   : > { %v495_v32 = vpop.permute.xlu0 %494  ;;  %v708_v42 = vpop.permute.xlu1 %707 }
 0x17f   : > { %v563_v25 = vsel %vm560_vm8, %v493_v1, %v495_v32 }
 0x180   : > { %678 = vmatpush.bf16.msrb.mxu1 %v575_v26 }
 0x182   : > { %920 = vrot.lane.b32.xlu2 %v1349_v35, %s2208_s22 }
 0x184   : > { %679 = vmatpush.bf16.msrb.mxu1 %v572_v28 }
 0x186   : > { %v726_v45 = vpop.permute.xlu0 %725  ;;  %v731_v58 = vpop.permute.xlu1 %730 }
 0x188   : > { %680 = vmatpush.bf16.msrb.mxu1 %v569_v29 }
 0x18c   : > { %681 = vmatpush.bf16.msrb.mxu1 %v566_v31 }
 0x190   : > { %682 = vmatpush.bf16.msrb.mxu1 %v563_v25 }
 0x193   : > { %683 = vmatmul.bf16.vlgmr.msrb.gmra.mxu1 %v1338_v4 }
 0x1e6   : > { %v656_v39 = vpop.f32.mrf.mxu2  ;;  %v670_v40 = vpop.f32.mrf.mxu3 }
 0x1e7   : > { %v671_v41 = vadd.f32 %v670_v40, %v656_v39 }
 0x1e9   : > { %v716_v43 = vmul.f32 %v708_v42, %v671_v41 }
 0x1eb   : > { %v734_v49 = vadd.f32 %v726_v45, %v716_v43 }
 0x1ec   : > { %v628_v44 = vpop.f32.mrf.mxu0 }
 0x1ed   : > { %v740_v57 = vmax.f32 %v734_v49, 0.0 }
 0x1ee   : > { %v658_v46 = vpop.f32.mrf.mxu2  ;;  %v672_v47 = vpop.f32.mrf.mxu3 }
 0x1ef   : > { %v673_v48 = vadd.f32 %v672_v47, %v658_v46  ;;  %v754_v0 = vmul.f32 %v748_v56, %v740_v57 }
 0x1f0   : > { %v642_v50 = vpop.f32.mrf.mxu1 }
 0x1f1   : > { %v643_v53 = vadd.f32 %v642_v50, %v628_v44  ;;  %v719_v55 = vmul.f32 %v713_v51, %v673_v48 }
 0x1f3   : > { %v715_v54 = vmul.f32 %v708_v42, %v643_v53  ;;  %v737_v62 = vadd.f32 %v731_v58, %v719_v55 }
 0x1f4   : > { %v630_v61 = vpop.f32.mrf.mxu0 }
 0x1f5   : > { %v733_v60 = vadd.f32 %v726_v45, %v715_v54  ;;  %v743_v5 = vmax.f32 %v737_v62, 0.0  ;;  %v894_v62 = vpop.permute.xlu1 %893 }
 0x1f7   : > { %v739_v63 = vmax.f32 %v733_v60, 0.0  ;;  %v757_v9 = vmul.f32 %v748_v56, %v743_v5  ;;  %v818_v56 = vpop.permute.xlu2 %817 }
 0x1f8   : > { %v644_v1 = vpop.f32.mrf.mxu1 }
 0x1f9   : > { %v645_v2 = vadd.f32 %v644_v1, %v630_v61  ;;  %v753_v3 = vmul.f32 %v747_v59, %v739_v63 }
 0x1fb   : > { %v718_v4 = vmul.f32 %v713_v51, %v645_v2  ;;  %v759_v6 = vpack.c.bf16 %v754_v0, %v753_v3 }
 0x1fd   : > { %v736_v7 = vadd.f32 %v731_v58, %v718_v4  ;;  %767 = vst [vmem:[#allocation2 + $0x4] sm:$0xff] %v759_v6  ;;  %v832_v12 = vunpack.c.l.b16 %v759_v6  ;;  %v833_v35 = vunpack.c.h.b16 %v759_v6 }
 0x1fe   : > { %v698_v15 = vpop.f32.mrf.mxu3 }
 0x1ff   : > { %v742_v8 = vmax.f32 %v736_v7, 0.0  ;;  %v2008_v57 = vpop.permute.xlu2 %795 }
 0x201   : > { %v756_v10 = vmul.f32 %v747_v59, %v742_v8  ;;  %v807_v59 = vpop.permute.xlu0 %806 }
 0x203   : > { %v761_v11 = vpack.c.bf16 %v757_v9, %v756_v10 }
 0x204   : > { %v1409_v44 = vld [vmem:[#allocation2 + $0x8] sm:$0xf]  ;;  %v1364_v47 = vld [vmem:[#allocation2 + $0x4] sm:$0xf] }
 0x205   : > { %769 = vst [vmem:[#allocation2 + $0x18] sm:$0xff] %v761_v11  ;;  %v835_v13 = vunpack.c.l.b16 %v761_v11  ;;  %v836_v36 = vunpack.c.h.b16 %v761_v11  ;;  %v1405_v50 = vld [vmem:[#allocation2 + $0x4] sm:$0xf]  ;;  %v1356_v52 = vld [vmem:[#allocation2 + $0x8] sm:$0xf] }
 0x206   : > { %v700_v22 = vpop.f32.mrf.mxu3 }
 0x207   : > { %v838_v14 = vpack.c.b16 %v835_v13, %v832_v12  ;;  %v839_v40 = vpack.c.b16 %v836_v36, %v833_v35 }
 0x209   : > { %841 = vrot.lane.b32.xlu0 %v838_v14, %s2209_s18  ;;  %v883_v61 = vpop.permute.xlu0 %882 }
 0x20c   : > { %v1411_v48 = vld [vmem:[#allocation2 + $0x14] sm:$0xf0]  ;;  %v1408_v53 = vld [vmem:[#allocation2 + $0x18] sm:$0xf0] }
 0x20d   : > { %v1365_v49 = vor.u32 %v1411_v48, %v1364_v47  ;;  %v1994_v55 = vor.u32 %v1408_v53, %v1356_v52  ;;  %v1133_v48 = vld [vmem:[%s2188_s6] sm:$0xff] }
 0x210   : > { %v684_v16 = vpop.f32.mrf.mxu1 }
 0x211   : > { %v699_v17 = vadd.f32 %v698_v15, %v684_v16  ;;  %v905_v1 = vpop.permute.xlu0 %904 }
 0x213   : > { %v717_v18 = vmul.f32 %v708_v42, %v699_v17 }
 0x215   : > { %v735_v19 = vadd.f32 %v726_v45, %v717_v18  ;;  %v1366_v45 = vld [vmem:[#allocation2 + $0x18] sm:$0xf0] }
 0x216   : > { %v1369_v46 = vor.u32 %v1409_v44, %v1366_v45 }
 0x217   : > { %v741_v21 = vmax.f32 %v735_v19, 0.0 }
 0x218   : > { %v686_v23 = vpop.f32.mrf.mxu1 }
 0x219   : > { %v755_v24 = vmul.f32 %v749_v20, %v741_v21  ;;  %v701_v26 = vadd.f32 %v700_v22, %v686_v23 }
 0x21b   : > { %v760_v27 = vpack.c.bf16 %v755_v24, %v755_v24  ;;  %v720_v28 = vmul.f32 %v713_v51, %v701_v26  ;;  %v1350_v51 = vld [vmem:[#allocation2 + $0x14] sm:$0xf0] }
 0x21c   : > { %v1353_v54 = vor.u32 %v1405_v50, %v1350_v51  ;;  %v1152_v51 = vld [vmem:[%s2189_s7 + $0x8] sm:$0xff] }
 0x21d   : > { %768 = vst [vmem:[#allocation2 + $0xc] sm:$0xf] %v760_v27  ;;  %v738_v29 = vadd.f32 %v731_v58, %v720_v28  ;;  %v834_v25 = vunpack.c.l.b16 %v760_v27  ;;  %v872_v58 = vpop.permute.xlu2 %871 }
 0x21f   : > { %v744_v30 = vmax.f32 %v738_v29, 0.0 }
 0x221   : > { %v758_v31 = vmul.f32 %v749_v20, %v744_v30 }
 0x223   : > { %v762_v32 = vpack.c.bf16 %v758_v31, %v758_v31 }
 0x224   : > { %v1372_v37 = vld [vmem:[#allocation2 + $0xc] sm:$0xf] }
 0x225   : > { %770 = vst [vmem:[#allocation2 + $0x20] sm:$0xf] %v762_v32  ;;  %v837_v33 = vunpack.c.l.b16 %v762_v32  ;;  %v1406_v42 = vld [vmem:[#allocation2 + $0xc] sm:$0xf]  ;;  %v2010_v60 = vpop.permute.xlu2 %920 }
 0x227   : > { %v840_v34 = vpack.c.b16 %v837_v33, %v834_v25 }
 0x229   : > { %845 = vrot.lane.b32.xlu1 %v840_v34, %s2209_s18 }
 0x22c   : > { %v1412_v38 = vld [vmem:[#allocation2 + $0x1c] sm:$0xf0] }
 0x22d   : > { %v1373_v39 = vor.u32 %v1412_v38, %v1372_v37  ;;  %v1358_v41 = vld [vmem:[#allocation2 + $0x1c] sm:$0xf0] }
 0x22e   : > { %v1978_v43 = vor.u32 %v1406_v42, %v1358_v41 }
 0x22f   : > { %891 = vrot.lane.b32.xlu2 %v1373_v39, %s1583_s15  ;;  %880 = vrot.lane.b32.xlu0 %v1373_v39, %s1584_s24 }
 0x231   : > { %843 = vrot.lane.b32.xlu1 %v839_v40, %s2209_s18  ;;  %s1533_s18 = scalar_lea.hbm %s2190_s8, 96 }
 0x237   : > { %869 = vrot.lane.b32.xlu2 %v1373_v39, %s2207_s26  ;;  %823 = vrot.lane.b32.xlu0 %v1978_v43, %s1587_s10 }
 0x239   : > { %812 = vrot.lane.b32.xlu1 %v1978_v43, %s1588_s12 }
 0x23f   : > { %801 = vrot.lane.b32.xlu2 %v1978_v43, %s1589_s13  ;;  %902 = vrot.lane.b32.xlu0 %v1373_v39, %s1590_s19 }
 0x241   : > { %889 = vrot.lane.b32.xlu1 %v1369_v46, %s1583_s15 }
 0x247   : > { %887 = vrot.lane.b32.xlu2 %v1365_v49, %s1583_s15  ;;  %878 = vrot.lane.b32.xlu0 %v1369_v46, %s1584_s24 }
 0x249   : > { %865 = vrot.lane.b32.xlu1 %v1365_v49, %s2207_s26 }
 0x24f   : > { %876 = vrot.lane.b32.xlu2 %v1365_v49, %s1584_s24  ;;  %819 = vrot.lane.b32.xlu0 %v1353_v54, %s1587_s10 }
 0x251   : > { %821 = vrot.lane.b32.xlu1 %v1994_v55, %s1587_s10  ;;  %s1418_s10 = smul.u32 48, %s1716_s23 }
 0x257   : > { %867 = vrot.lane.b32.xlu2 %v1369_v46, %s2207_s26  ;;  %797 = vrot.lane.b32.xlu0 %v1353_v54, %s1589_s13 }
 0x259   : > { %808 = vrot.lane.b32.xlu1 %v1353_v54, %s1588_s12 }
 0x25f   : > { %810 = vrot.lane.b32.xlu2 %v1994_v55, %s1588_s12  ;;  %922 = vrot.lane.b32.xlu0 %v1353_v54, %s2208_s22  ;;  %s2139_s12 = scalar_lea.vmem [#allocation6], %s1418_s10 }
 0x261   : > { %799 = vrot.lane.b32.xlu1 %v1994_v55, %s1589_s13  ;;  %s1419_s13 = smul.u32 48, %s1661_s9 }
 0x263   : > { %s1209_s9 = scalar_lea.hbm %s2190_s8, %s1419_s13 }
 0x264   : > { %s1212_s29 = sshll.u32 %s1209_s9, 4  ;;  %s1213_s29 = int_to_ptr.hbm [resolvable:$true] %s1212_s29 }
 0x265   : > { %s1527_s26 = sshra.s32 %s1213_s29, 4  ;;  %s1528_s26 = int_to_ptr.hbm [resolvable:$true] %s1527_s26 }
 0x266   : > { %p1534_p3 = scmp.lt.s32.totalorder %s1528_s26, %s2190_s8 }
 0x267   : > { %900 = vrot.lane.b32.xlu2 %v1369_v46, %s1590_s19 }
 0x269   : > { %898 = vrot.lane.b32.xlu1 %v1365_v49, %s1590_s19  ;;  %v1134_v49 = vld [vmem:[%s2188_s6 + $0x8] sm:$0xff] }
 0x27b   : > { %v842_v3 = vpop.permute.xlu0 %841 }
 0x289   : > { %v892_v63 = vpop.permute.xlu2 %891 }
 0x28a   : > { %v897_v0 = vsel %vm461_vm0, %v892_v63, %v894_v62 }
 0x28b   : > { %982 = vrot.lane.b32.xlu0 %v897_v0, %s2208_s22 }
 0x291   : > { %v870_v2 = vpop.permute.xlu2 %869 }
 0x292   : > { %v875_v13 = vsel %vm437_vm2, %v870_v2, %v872_v58 }
 0x299   : > { %v2014_v4 = vpop.permute.xlu2 %801 }
 0x29b   : > { %v846_v5 = vpop.permute.xlu1 %845 }
 0x29c   : > { %958 = vrot.lane.b32.xlu1 %v846_v5, %s2208_s22 }
 0x2a1   : > { %v888_v6 = vpop.permute.xlu2 %887  ;;  %v881_v7 = vpop.permute.xlu0 %880 }
 0x2a2   : > { %976 = vrot.lane.b32.xlu0 %v888_v6, %s2208_s22  ;;  %v886_v12 = vsel %vm449_vm1, %v881_v7, %v883_v61 }
 0x2a3   : > { %v844_v8 = vpop.permute.xlu1 %843 }
 0x2a4   : > { %952 = vrot.lane.b32.xlu1 %v842_v3, %s2208_s22  ;;  %v847_v9 = vsel %vm410_vm3, %v842_v3, %v844_v8  ;;  %v848_v18 = vsel %vm410_vm3, %v844_v8, %v846_v5 }
 0x2a5   : > { %954 = vrot.lane.b32.xlu2 %v847_v9, %s2208_s22 }
 0x2a9   : > { %v824_v10 = vpop.permute.xlu0 %823  ;;  %v877_v14 = vpop.permute.xlu2 %876 }
 0x2ab   : > { %v813_v11 = vpop.permute.xlu1 %812 }
 0x2ac   : > { %974 = vrot.lane.b32.xlu1 %v886_v12, %s2208_s22 }
 0x2ad   : > { %966 = vrot.lane.b32.xlu2 %v875_v13, %s2208_s22 }
 0x2b1   : > { %v903_v15 = vpop.permute.xlu0 %902  ;;  %v868_v21 = vpop.permute.xlu2 %867 }
 0x2b2   : > { %v908_v16 = vsel %vm473_vm7, %v903_v15, %v905_v1  ;;  %v874_v37 = vsel %vm437_vm2, %v868_v21, %v870_v2 }
 0x2b3   : > { %v890_v17 = vpop.permute.xlu1 %889 }
 0x2b4   : > { %956 = vrot.lane.b32.xlu1 %v848_v18, %s2208_s22  ;;  %v895_v28 = vsel %vm461_vm0, %v888_v6, %v890_v17  ;;  %v896_v29 = vsel %vm461_vm0, %v890_v17, %v892_v63 }
 0x2b5   : > { %968 = vrot.lane.b32.xlu2 %v877_v14, %s2208_s22 }
 0x2b9   : > { %v879_v19 = vpop.permute.xlu0 %878  ;;  %v811_v33 = vpop.permute.xlu2 %810 }
 0x2ba   : > { %v884_v20 = vsel %vm449_vm1, %v877_v14, %v879_v19  ;;  %v885_v32 = vsel %vm449_vm1, %v879_v19, %v881_v7  ;;  %v816_v44 = vsel %vm375_vm5, %v811_v33, %v813_v11 }
 0x2bb   : > { %v866_v22 = vpop.permute.xlu1 %865  ;;  %970 = vrot.lane.b32.xlu0 %v884_v20, %s2208_s22 }
 0x2bc   : > { %960 = vrot.lane.b32.xlu1 %v866_v22, %s2208_s22  ;;  %v873_v23 = vsel %vm437_vm2, %v866_v22, %v868_v21 }
 0x2bd   : > { %962 = vrot.lane.b32.xlu2 %v873_v23, %s2208_s22 }
 0x2c1   : > { %v820_v24 = vpop.permute.xlu0 %819  ;;  %v901_v41 = vpop.permute.xlu2 %900 }
 0x2c2   : > { %v825_v26 = vsel %vm387_vm4, %v818_v56, %v820_v24  ;;  %v907_v45 = vsel %vm473_vm7, %v901_v41, %v903_v15 }
 0x2c3   : > { %v822_v27 = vpop.permute.xlu1 %821  ;;  %944 = vrot.lane.b32.xlu0 %v825_v26, %s2208_s22 }
 0x2c4   : > { %978 = vrot.lane.b32.xlu1 %v895_v28, %s2208_s22  ;;  %v826_v31 = vsel %vm387_vm4, %v820_v24, %v822_v27  ;;  %v827_v40 = vsel %vm387_vm4, %v822_v27, %v824_v10 }
 0x2c5   : > { %980 = vrot.lane.b32.xlu2 %v896_v29, %s2208_s22 }
 0x2c9   : > { %v798_v34 = vpop.permute.xlu0 %797 }
 0x2ca   : > { %v803_v39 = vsel %vm363_vm6, %v2008_v57, %v798_v34 }
 0x2cb   : > { %v809_v30 = vpop.permute.xlu1 %808 }
 0x2cc   : > { %946 = vrot.lane.b32.xlu1 %v826_v31, %s2208_s22  ;;  %v814_v25 = vsel %vm375_vm5, %v807_v59, %v809_v30  ;;  %v815_v36 = vsel %vm375_vm5, %v809_v30, %v811_v33  ;;  %v1380_v31 = vld [vmem:[%s2187_s5] sm:$0xf] }
 0x2cd   : > { %972 = vrot.lane.b32.xlu2 %v885_v32, %s2208_s22  ;;  %936 = vrot.lane.b32.xlu0 %v814_v25, %s2208_s22  ;;  %v1414_v32 = vld [vmem:[%s2187_s5 + $0x4] sm:$0xf0] }
 0x2ce   : > { %v1381_v33 = vor.u32 %v1414_v32, %v1380_v31 }
 0x2d3   : > { %v800_v35 = vpop.permute.xlu1 %799 }
 0x2d4   : > { %938 = vrot.lane.b32.xlu1 %v815_v36, %s2208_s22  ;;  %v804_v38 = vsel %vm363_vm6, %v798_v34, %v800_v35  ;;  %v805_v47 = vsel %vm363_vm6, %v800_v35, %v2014_v4  ;;  %v1413_v35 = vld [vmem:[%s2187_s5 + $0x4] sm:$0xf]  ;;  %v1382_v36 = vld [vmem:[%s2187_s5 + $0x8] sm:$0xf0] }
 0x2d5   : > { %964 = vrot.lane.b32.xlu0 %v874_v37, %s2208_s22  ;;  %930 = vrot.lane.b32.xlu2 %v804_v38, %s2208_s22 }
 0x2db   : > { %v899_v42 = vpop.permute.xlu1 %898 }
 0x2dc   : > { %928 = vrot.lane.b32.xlu1 %v803_v39, %s2208_s22  ;;  %v906_v46 = vsel %vm473_vm7, %v899_v42, %v901_v41 }
 0x2dd   : > { %948 = vrot.lane.b32.xlu0 %v827_v40, %s2208_s22  ;;  %950 = vrot.lane.b32.xlu2 %v824_v10, %s2208_s22 }
 0x2e4   : > { %940 = vrot.lane.b32.xlu1 %v816_v44, %s2208_s22 }
 0x2e5   : > { %988 = vrot.lane.b32.xlu0 %v907_v45, %s2208_s22  ;;  %986 = vrot.lane.b32.xlu2 %v906_v46, %s2208_s22 }
 0x2ec   : > { %942 = vrot.lane.b32.xlu1 %v813_v11, %s2208_s22 }
 0x2ed   : > { %932 = vrot.lane.b32.xlu0 %v805_v47, %s2208_s22  ;;  %924 = vrot.lane.b32.xlu2 %v1994_v55, %s2208_s22  ;;  %v2088_v55 = vpop.permute.xlu0 %922 }
 0x2ee   : > { %v992_v25 = vsel %vm560_vm8, %v2010_v60, %v2088_v55  ;;  %v1385_v60 = vor.u32 %v1413_v35, %v1382_v36 }
 0x2f4   : > { %934 = vrot.lane.b32.xlu1 %v2014_v4, %s2208_s22 }
 0x2f5   : > { %984 = vrot.lane.b32.xlu0 %v899_v42, %s2208_s22  ;;  %926 = vrot.lane.b32.xlu2 %v1978_v43, %s2208_s22  ;;  %v1151_v43 = vld [vmem:[%s2189_s7] sm:$0xff] }
 0x2fc   : > { %1137 = vperm.xlu1 %1480, %v1133_v48  }
 0x2fd   : > { %990 = vrot.lane.b32.xlu0 %v908_v16, %s2208_s22  ;;  %1142 = vperm.xlu2 %1481, %v1134_v49   ;;  %v983_v58 = vpop.permute.xlu0 %982  ;;  %s1529_s22 = scalar_lea.hbm %s1528_s26, 48 }
 0x2fe   : > { %p1530_p6 = scmp.ne.s32.totalorder %s1528_s26, %s1529_s22  ;;  %p1535_p4 = scmp.lt.s32.totalorder %s1533_s18, %s1529_s22 }
 0x2ff   : > { %v955_v50 = vpop.permute.xlu2 %954 }
 0x300   : > { %p1531_p13 = pnand %p1530_p6, %p1686_p11  ;;  %p1536_p5 = por %p1535_p4, %p1534_p3 }
 0x302   : > { %p1532_p2 = pneg %p1531_p13 }
 0x304   : > { %1160 = vperm.xlu1 %1480, %v1152_v51   ;;  %p1537_p7 = pnand %p1536_p5, %p1532_p2 }
 0x305   : > { %1155 = vperm.xlu0 %1482, %v1151_v43  }
 0x307   : > { %v967_v52 = vpop.permute.xlu2 %966 }
 0x30e   : > { %v959_v53 = vpop.permute.xlu1 %958 }
 0x30f   : > { %v969_v54 = vpop.permute.xlu2 %968 }
 0x314   : > { %v977_v63 = vpop.permute.xlu0 %976 }
 0x316   : > { %v953_v56 = vpop.permute.xlu1 %952 }
 0x317   : > { %v963_v57 = vpop.permute.xlu2 %962  ;;  %v1004_v15 = vsel %vm560_vm8, %v953_v56, %v955_v50 }
 0x31e   : > { %v975_v59 = vpop.permute.xlu1 %974 }
 0x31f   : > { %v981_v61 = vpop.permute.xlu2 %980 }
 0x320   : > { %v1015_v62 = vsel %vm560_vm8, %v981_v61, %v983_v58 }
 0x321   : > { %1105 = vmatpush.bf16.msrb.mxu0 %v1015_v62 }
 0x326   : > { %v957_v0 = vpop.permute.xlu1 %956 }
 0x327   : > { %v973_v1 = vpop.permute.xlu2 %972  ;;  %v1005_v23 = vsel %vm560_vm8, %v955_v50, %v957_v0  ;;  %v1006_v24 = vsel %vm560_vm8, %v957_v0, %v959_v53 }
 0x328   : > { %v1012_v2 = vsel %vm560_vm8, %v973_v1, %v975_v59 }
 0x329   : > { %1106 = vmatpush.bf16.msrb.mxu0 %v1012_v2 }
 0x32d   : > { %v971_v3 = vpop.permute.xlu0 %970 }
 0x32e   : > { %v961_v4 = vpop.permute.xlu1 %960  ;;  %v1010_v9 = vsel %vm560_vm8, %v969_v54, %v971_v3  ;;  %v1011_v10 = vsel %vm560_vm8, %v971_v3, %v973_v1 }
 0x32f   : > { %v1007_v13 = vsel %vm560_vm8, %v961_v4, %v963_v57  ;;  %v931_v14 = vpop.permute.xlu2 %930 }
 0x335   : > { %v945_v6 = vpop.permute.xlu0 %944 }
 0x336   : > { %v979_v5 = vpop.permute.xlu1 %978 }
 0x337   : > { %v1013_v7 = vsel %vm560_vm8, %v977_v63, %v979_v5  ;;  %v1014_v8 = vsel %vm560_vm8, %v979_v5, %v981_v61  ;;  %v951_v21 = vpop.permute.xlu2 %950  ;;  %v1169_v61 = vld [vmem:[%s1720_s14 + $0x4] sm:$0xff] }
 0x338   : > { %1049 = vmatpush.bf16.msra.mxu3 %v1013_v7  ;;  %1077 = vmatpush.bf16.msrb.mxu2 %v1014_v8  ;;  %v1174_v2 = vunpack.c.h.bf16 %v1169_v61  ;;  %v1170_v7 = vld [vmem:[%s1720_s14 + $0xc] sm:$0xf] }
 0x33c   : > { %1050 = vmatpush.bf16.msra.mxu3 %v1010_v9  ;;  %1078 = vmatpush.bf16.msrb.mxu2 %v1011_v10 }
 0x33e   : > { %v947_v11 = vpop.permute.xlu1 %946 }
 0x33f   : > { %v937_v12 = vpop.permute.xlu0 %936  ;;  %v1001_v18 = vsel %vm560_vm8, %v945_v6, %v947_v11  ;;  %v987_v34 = vpop.permute.xlu2 %986 }
 0x340   : > { %1051 = vmatpush.bf16.msra.mxu3 %v1007_v13  ;;  %v1175_v13 = vunpack.c.l.bf16 %v1170_v7 }
 0x344   : > { %1052 = vmatpush.bf16.msra.mxu3 %v1004_v15  ;;  %v1171_v15 = vld [vmem:[%s1720_s14 + $0x18] sm:$0xff] }
 0x345   : > { %v1176_v32 = vunpack.c.l.bf16 %v1171_v15 }
 0x346   : > { %v939_v16 = vpop.permute.xlu1 %938 }
 0x347   : > { %v965_v17 = vpop.permute.xlu0 %964  ;;  %v998_v22 = vsel %vm560_vm8, %v937_v12, %v939_v16  ;;  %v925_v41 = vpop.permute.xlu2 %924 }
 0x348   : > { %1053 = vmatpush.bf16.msra.mxu3 %v1001_v18  ;;  %v1008_v19 = vsel %vm560_vm8, %v963_v57, %v965_v17  ;;  %v1009_v20 = vsel %vm560_vm8, %v965_v17, %v967_v52  ;;  %v993_v47 = vsel %vm560_vm8, %v2088_v55, %v925_v41 }
 0x349   : > { %1079 = vmatpush.bf16.msrb.mxu2 %v1008_v19  ;;  %1107 = vmatpush.bf16.msrb.mxu0 %v1009_v20 }
 0x34c   : > { %1054 = vmatpush.bf16.msra.mxu3 %v998_v22 }
 0x34d   : > { %1080 = vmatpush.bf16.msrb.mxu2 %v1005_v23  ;;  %1108 = vmatpush.bf16.msrb.mxu0 %v1006_v24  ;;  %v1177_v24 = vunpack.c.h.bf16 %v1171_v15 }
 0x34e   : > { %v929_v26 = vpop.permute.xlu1 %928 }
 0x34f   : > { %v949_v27 = vpop.permute.xlu0 %948  ;;  %v995_v28 = vsel %vm560_vm8, %v929_v26, %v931_v14  ;;  %v927_v51 = vpop.permute.xlu2 %926 }
 0x350   : > { %1055 = vmatpush.bf16.msra.mxu3 %v995_v28  ;;  %v1002_v29 = vsel %vm560_vm8, %v947_v11, %v949_v27  ;;  %v1003_v30 = vsel %vm560_vm8, %v949_v27, %v951_v21  ;;  %v994_v52 = vsel %vm560_vm8, %v925_v41, %v927_v51  ;;  %v1173_v11 = vunpack.c.l.bf16 %v1169_v61 }
 0x351   : > { %1081 = vmatpush.bf16.msrb.mxu2 %v1002_v29  ;;  %1109 = vmatpush.bf16.msrb.mxu0 %v1003_v30 }
 0x354   : > { %1056 = vmatpush.bf16.msra.mxu3 %v992_v25 }
 0x356   : > { %v941_v37 = vpop.permute.xlu1 %940 }
 0x357   : > { %v989_v38 = vpop.permute.xlu0 %988  ;;  %v999_v39 = vsel %vm560_vm8, %v939_v16, %v941_v37  ;;  %1057 = vmatmul.bf16.vlgmr.msra.gmra.mxu3 %v1381_v33  ;;  %v1143_v20 = vpop.permute.xlu2 %1142 }
 0x358   : > { %v1017_v40 = vsel %vm560_vm8, %v987_v34, %v989_v38  ;;  %1082 = vmatpush.bf16.msrb.mxu2 %v999_v39 }
 0x359   : > { %1098 = vmatpush.bf16.msra.mxu1 %v1017_v40 }
 0x35c   : > { %1387 = vmatmul.msk.bf16.vlgmr.msra.gmra.mxu1 %vm615_vm9, %v1385_v60 }
 0x35e   : > { %v943_v42 = vpop.permute.xlu1 %942 }
 0x35f   : > { %v933_v44 = vpop.permute.xlu0 %932  ;;  %v1000_v45 = vsel %vm560_vm8, %v941_v37, %v943_v42 }
 0x360   : > { %1110 = vmatpush.bf16.msrb.mxu0 %v1000_v45  ;;  %v996_v46 = vsel %vm560_vm8, %v931_v14, %v933_v44 }
 0x361   : > { %1083 = vmatpush.bf16.msrb.mxu2 %v996_v46 }
 0x365   : > { %1084 = vmatpush.bf16.msrb.mxu2 %v993_v47 }
 0x366   : > { %v935_v48 = vpop.permute.xlu1 %934 }
 0x367   : > { %v985_v49 = vpop.permute.xlu0 %984  ;;  %v997_v50 = vsel %vm560_vm8, %v933_v44, %v935_v48 }
 0x368   : > { %v1016_v43 = vsel %vm560_vm8, %v985_v49, %v987_v34  ;;  %1085 = vmatmul.bf16.vlgmr.msrb.gmra.mxu2 %v1381_v33  ;;  %1111 = vmatpush.bf16.msrb.mxu0 %v997_v50  ;;  %v1172_v34 = vld [vmem:[%s1720_s14 + $0x20] sm:$0xf]  ;;  %s1210_s14 = sshll.u32 %s2139_s12, 4  ;;  %s1211_s14 = int_to_ptr.vmem [resolvable:$true] %s1210_s14 }
 0x369   : > { %1070 = vmatpush.bf16.msrb.mxu3 %v1016_v43  ;;  %v1178_v41 = vunpack.c.l.bf16 %v1172_v34 }
 0x36c   : > { %1386 = vmatmul.msk.bf16.vlgmr.msrb.gmra.mxu3 %vm615_vm9, %v1385_v60  ;;  %1112 = vmatpush.bf16.msrb.mxu0 %v994_v52 }
 0x36e   : > { %v1138_v63 = vpop.permute.xlu1 %1137 }
 0x36f   : > { %v991_v53 = vpop.permute.xlu0 %990  ;;  %1113 = vmatmul.bf16.vlgmr.msrb.gmra.mxu0 %v1381_v33 }
 0x370   : > { %v1018_v54 = vsel %vm560_vm8, %v989_v38, %v991_v53 }
 0x371   : > { %1126 = vmatpush.bf16.msrb.mxu1 %v1018_v54 }
 0x374   : > { %1388 = vmatmul.msk.bf16.vlgmr.msrb.gmra.mxu1 %vm615_vm9, %v1385_v60 }
 0x376   : > { %v1161_v26 = vpop.permute.xlu1 %1160 }
 0x377   : > { %v1156_v0 = vpop.permute.xlu0 %1155 }
 0x3d9   : > { %v1100_v56 = vpop.f32.mrf.mxu1 }
 0x3da   : > { %v1058_v55 = vpop.f32.mrf.mxu3 }
 0x3e1   : > { %v1102_v58 = vpop.f32.mrf.mxu1 }
 0x3e2   : > { %v1060_v57 = vpop.f32.mrf.mxu3 }
 0x3eb   : > { %v1086_v59 = vpop.f32.mrf.mxu2 }
 0x3ec   : > { %v1101_v62 = vadd.f32 %v1100_v56, %v1086_v59  ;;  %v1114_v4 = vpop.f32.mrf.mxu0 }
 0x3ee   : > { %v1146_v1 = vmul.f32 %v1138_v63, %v1101_v62 }
 0x3ef   : > { %v1072_v3 = vpop.f32.mrf.mxu3 }
 0x3f0   : > { %v1164_v5 = vadd.f32 %v1156_v0, %v1146_v1  ;;  %v1073_v6 = vadd.f32 %v1072_v3, %v1058_v55 }
 0x3f1   : > { %v1128_v8 = vpop.f32.mrf.mxu1 }
 0x3f2   : > { %v1180_v9 = vadd.f32 %v1174_v2, %v1164_v5  ;;  %v1145_v10 = vmul.f32 %v1138_v63, %v1073_v6  ;;  %v1129_v12 = vadd.f32 %v1128_v8, %v1114_v4 }
 0x3f3   : > { %v1088_v14 = vpop.f32.mrf.mxu2 }
 0x3f4   : > { %v1186_v16 = vmax.f32 %v1180_v9, 0.0  ;;  %v1163_v17 = vadd.f32 %v1156_v0, %v1145_v10  ;;  %v1147_v18 = vmul.f32 %v1138_v63, %v1129_v12  ;;  %v1103_v19 = vadd.f32 %v1102_v58, %v1088_v14  ;;  %v1116_v25 = vpop.f32.mrf.mxu0 }
 0x3f6   : > { %1192 = vst [vmem:[%s2139_s12 + $0x8] sm:$0xff] %v1186_v16  ;;  %v1179_v21 = vadd.f32 %v1173_v11, %v1163_v17  ;;  %v1165_v22 = vadd.f32 %v1156_v0, %v1147_v18  ;;  %v1149_v23 = vmul.f32 %v1143_v20, %v1103_v19 }
 0x3f7   : > { %v1074_v27 = vpop.f32.mrf.mxu3 }
 0x3f8   : > { %v1185_v28 = vmax.f32 %v1179_v21, 0.0  ;;  %v1181_v29 = vadd.f32 %v1175_v13, %v1165_v22  ;;  %v1167_v30 = vadd.f32 %v1161_v26, %v1149_v23  ;;  %v1075_v31 = vadd.f32 %v1074_v27, %v1060_v57 }
 0x3f9   : > { %v1130_v33 = vpop.f32.mrf.mxu1 }
 0x3fa   : > { %1191 = vst [vmem:[%s2139_s12] sm:$0xff] %v1185_v28  ;;  %v1187_v35 = vmax.f32 %v1181_v29, 0.0  ;;  %v1183_v36 = vadd.f32 %v1177_v24, %v1167_v30  ;;  %v1148_v37 = vmul.f32 %v1143_v20, %v1075_v31  ;;  %v1131_v38 = vadd.f32 %v1130_v33, %v1116_v25 }
 0x3fc   : > { %1193 = vst [vmem:[%s2139_s12 + $0x10] sm:$0xff] %v1187_v35  ;;  %v1189_v39 = vmax.f32 %v1183_v36, 0.0  ;;  %v1166_v40 = vadd.f32 %v1161_v26, %v1148_v37  ;;  %v1150_v60 = vmul.f32 %v1143_v20, %v1131_v38 }
 0x3fe   : > { %1195 = vst [vmem:[%s2139_s12 + $0x20] sm:$0xff] %v1189_v39  ;;  %v1182_v42 = vadd.f32 %v1176_v32, %v1166_v40  ;;  %v1168_v44 = vadd.f32 %v1161_v26, %v1150_v60 }
 0x400   : > { %v1188_v45 = vmax.f32 %v1182_v42, 0.0  ;;  %v1184_v46 = vadd.f32 %v1178_v41, %v1168_v44 }
 0x402   : > { %1194 = vst [vmem:[%s2139_s12 + $0x18] sm:$0xff] %v1188_v45  ;;  %v1190_v47 = vmax.f32 %v1184_v46, 0.0 }
 0x404   : > { %1196 = vst [vmem:[%s2139_s12 + $0x28] sm:$0xff] %v1190_v47 }
 0x405   : > { %1540 = shalt.err (!%p1537_p7)
}
 0x406   : > { %s1593_s23 = smov 384   ;;  %s1594_s10 = smov 24  }
 0x407   : > { %1422 = dma.vmem_to_hbm [thread:$0]  (%p1686_p11), %s1211_s14, 768, %s1213_s29, %s1198_s11, %s1593_s23, %s1593_s23, %s1594_s10  }
 0x408 PF: > { %s1227_s12 = sand.u32 1, %s1567_s27   ;;  %p1429_p8 = pnand %p1288_p9, %p1690_p12 }
 0x409   : > { %s1228_s13 = scalar_lea.sflag [#allocation5], %s1227_s12 }
 0x40a   : > { %p1430_p10 = pneg %p1429_p8 }
 0x40c   : > { %1562 = dma.done.wait (%p1430_p10), %s1228_s13, 768  }
 0x40d   : > { %1564 = vsyncadd (%p1430_p10), %s1228_s13, 4294966528  ;;  %s2210_s30 = sld [smem:[#allocation10_spill]]  ;;  %s2213_s27 = smov %s1571_s28 }
 0x40e   : > { %s2211_s19 = sld [smem:[#allocation9_spill]] }
 0x40f   : > { %s2212_s29 = sld [smem:[#allocation11_spill]] }
 0x413   : > { %p21_p0 = scmp.ge.s32.totalorder %s2210_s30, 4  }
 0x414   : > { %s2214_s28 = smov %s2211_s19 }
 0x415   :  { %23 = sbr.rel (!%p21_p0) target bundleno = 5 (0x5), region = 97 }
 0x41a   :  { %1234 = vsyncpa [#allocation4], 1 }
 0x41b   :  { %1236 = vsyncpa [#allocation4 + $0x1], 1 }
 0x41c   :  { %1237 = vsyncpa [#allocation5], 1 }
 0x41d   :  { %1239 = vsyncpa [#allocation5 + $0x1], 1 }

</bundles_post_ra>
